<compile_context>
chip_gen: v5e
topology: v5e:2x2
jax: 0.10.0
libtpu: 0.0.40
codegen_flags: <defaults>
</compile_context>

<pallas_src>
import functools

import jax
import jax.numpy as jnp
from jax.experimental import pallas as pl
from jax.experimental.pallas import tpu as pltpu

LANE = 128  # pad feature dims and node count to multiples of this


def _round_up(v, m):
    return ((v + m - 1) // m) * m


def _pad2d(a, rows, cols):
    return jnp.pad(a, ((0, rows - a.shape[0]), (0, cols - a.shape[1])))


# ----------------------------------------------------------------------------
# Pallas kernel: one SAGEConv layer, grid = (N_pad // tm, N_pad // tk)
# ----------------------------------------------------------------------------
def _sage_conv_kernel(a_ref, xk_ref, xi_ref, w_ref, b_ref, o_ref, acc_ref, *,
                      apply_relu):
    # a_ref:   (tm, tk)              bf16  row-normalized adjacency tile
    # xk_ref:  (tk, Fin_pad)         bf16  neighbor features (k-indexed)
    # xi_ref:  (tm, Fin_pad)         bf16  root features (i-indexed)
    # w_ref:   (2*Fin_pad, Fout_pad) bf16  stacked [Wl; Wr]
    # b_ref:   (1, Fout_pad)         f32   bias (lin_l only)
    # o_ref:   (tm, Fout_pad)        out dtype
    # acc_ref: (tm, Fin_pad)         f32   aggregation accumulator (scratch)
    k = pl.program_id(1)

    @pl.when(k == 0)
    def _():
        acc_ref[...] = jnp.zeros_like(acc_ref)

    # Inner reduction loop: pure MXU + f32 accumulate (no VPU epilogue work).
    acc_ref[...] += jnp.dot(a_ref[...], xk_ref[...],
                            preferred_element_type=jnp.float32)

    @pl.when(k == pl.num_programs(1) - 1)
    def _():
        # Fused projection: one matmul with K = 2*Fin_pad instead of two
        # skinny ones -> halves MXU issue/pop for the tiny feature widths.
        feats = jnp.concatenate(
            [acc_ref[...].astype(xi_ref.dtype), xi_ref[...]], axis=-1)
        out = jnp.dot(feats, w_ref[...],
                      preferred_element_type=jnp.float32) + b_ref[...]
        if apply_relu:
            out = jnp.maximum(out, 0.0)
        o_ref[...] = out.astype(o_ref.dtype)


def _pick_tiles(n_pad):
    # Bigger reduction tiles amortize the ~0.35us/step pipeline overhead and
    # approach the HBM roofline, while (tm*tk + tk*F + tm*F) bf16 x 2 buffers
    # stays far below the 32 MiB scoped-VMEM default (and v7x's 64 MiB VMEM).
    tk = 512 if n_pad % 512 == 0 else 128
    tm = 256 if n_pad % 256 == 0 else 128
    return tm, tk


def sage_conv(a_pad, x_pad, w_stack, b_pad, *, apply_relu, out_dtype):
    """out = relu?((A @ X) @ Wl + X @ Wr + b), all inputs pre-padded."""
    n_pad = a_pad.shape[0]
    fin_pad = x_pad.shape[1]
    fout_pad = w_stack.shape[1]
    tm, tk = _pick_tiles(n_pad)

    return pl.pallas_call(
        functools.partial(_sage_conv_kernel, apply_relu=apply_relu),
        out_shape=jax.ShapeDtypeStruct((n_pad, fout_pad), out_dtype),
        grid_spec=pltpu.PrefetchScalarGridSpec(
            num_scalar_prefetch=0,
            grid=(n_pad // tm, n_pad // tk),
            in_specs=[
                pl.BlockSpec((tm, tk), lambda i, k: (i, k)),           # A
                pl.BlockSpec((tk, fin_pad), lambda i, k: (k, 0)),      # X (nbrs)
                pl.BlockSpec((tm, fin_pad), lambda i, k: (i, 0)),      # X (roots)
                pl.BlockSpec((2 * fin_pad, fout_pad), lambda i, k: (0, 0)),
                pl.BlockSpec((1, fout_pad), lambda i, k: (0, 0)),      # bias
            ],
            out_specs=pl.BlockSpec((tm, fout_pad), lambda i, k: (i, 0)),
            scratch_shapes=[pltpu.VMEM((tm, fin_pad), jnp.float32)],
        ),
        compiler_params=pltpu.CompilerParams(
            dimension_semantics=("parallel", "arbitrary")),
    )(a_pad, x_pad, x_pad, w_stack, b_pad)


# ----------------------------------------------------------------------------
# Graph glue (plain JAX): dense row-normalized adjacency from edge_index
# ----------------------------------------------------------------------------
def build_mean_adjacency(edge_index, num_nodes):
    # TODO(synk): for large sparse graphs, replace this dense O(N^2) scatter
    # with a CSR neighbor list consumed via scalar-prefetched gather index_maps.
    src = edge_index[0]
    dst = edge_index[1]
    a = jnp.zeros((num_nodes, num_nodes), jnp.float32)
    a = a.at[dst, src].add(1.0)                 # message flows src -> dst
    deg = jnp.sum(a, axis=1, keepdims=True)
    return a / jnp.maximum(deg, 1.0)            # isolated nodes -> zero agg


def _stack_and_pad_weights(w_l, w_r, b, fin_pad, fout_pad):
    wl = _pad2d(w_l, fin_pad, fout_pad)
    wr = _pad2d(w_r, fin_pad, fout_pad)
    w_stack = jnp.concatenate([wl, wr], axis=0).astype(jnp.bfloat16)
    b_pad = _pad2d(b.reshape(1, -1), 1, fout_pad).astype(jnp.float32)
    return w_stack, b_pad


# ----------------------------------------------------------------------------
# GraphSAGE forward
# ----------------------------------------------------------------------------
def graphsage_forward(params, x, edge_index):
    n, fin = x.shape
    hid = params["b1"].shape[0]
    fout = params["b2"].shape[0]

    n_pad = _round_up(n, LANE)
    fin_pad = _round_up(fin, LANE)
    hid_pad = _round_up(hid, LANE)
    fout_pad = _round_up(fout, LANE)

    # Mean-aggregation operator built once (bf16 on the MXU) and reused by
    # both layers.
    a_pad = _pad2d(build_mean_adjacency(edge_index, n), n_pad, n_pad)
    a_pad = a_pad.astype(jnp.bfloat16)
    x_pad = _pad2d(x, n_pad, fin_pad).astype(jnp.bfloat16)

    w1, b1 = _stack_and_pad_weights(params["wl1"], params["wr1"], params["b1"],
                                    fin_pad, hid_pad)
    w2, b2 = _stack_and_pad_weights(params["wl2"], params["wr2"], params["b2"],
                                    hid_pad, fout_pad)

    # Layer 1 (+ fused ReLU); hidden activations kept in bf16 to halve the
    # HBM round trip before layer 2.
    h = sage_conv(a_pad, x_pad, w1, b1, apply_relu=True,
                  out_dtype=jnp.bfloat16)
    # Layer 2.
    out = sage_conv(a_pad, h, w2, b2, apply_relu=False, out_dtype=jnp.float32)
    return out[:n, :fout]


def graphsage_reference(params, x, edge_index):
    """Pure-JAX f32 reference (matches PyG semantics)."""
    a = build_mean_adjacency(edge_index, x.shape[0])
    h = jnp.maximum(
        (a @ x) @ params["wl1"] + x @ params["wr1"] + params["b1"], 0.0)
    return (a @ h) @ params["wl2"] + h @ params["wr2"] + params["b2"]


def init_params(key, in_channels, hidden_channels, out_channels):
    k = jax.random.split(key, 4)

    def lin(kk, fin, fout):
        scale = 1.0 / jnp.sqrt(jnp.float32(fin))
        return jax.random.uniform(kk, (fin, fout), jnp.float32, -scale, scale)

    return {
        "wl1": lin(k[0], in_channels, hidden_channels),
        "wr1": lin(k[1], in_channels, hidden_channels),
        "b1": jnp.zeros((hidden_channels,), jnp.float32),
        "wl2": lin(k[2], hidden_channels, out_channels),
        "wr2": lin(k[3], hidden_channels, out_channels),
        "b2": jnp.zeros((out_channels,), jnp.float32),
    }


if __name__ == "__main__":
    key = jax.random.PRNGKey(0)
    k_x, k_e, k_p = jax.random.split(key, 3)

    num_nodes = 200          # deliberately not a tile multiple: tests padding
    num_edges = 800
    in_channels, hidden_channels, out_channels = 4, 32, 8

    x = jax.random.normal(k_x, (num_nodes, in_channels), jnp.float32)
    edge_index = jax.random.randint(
        k_e, (2, num_edges), 0, num_nodes, jnp.int32)

    params = init_params(k_p, in_channels, hidden_channels, out_channels)

    out = jax.jit(graphsage_forward)(params, x, edge_index)
    out = jax.block_until_ready(out)
    assert out.shape == (num_nodes, out_channels)

    # Tolerance check against the f32 reference (bf16 MXU path).
    ref = graphsage_reference(params, x, edge_index)
    max_err = float(jnp.max(jnp.abs(out - ref)))
    assert max_err < 1e-1, f"max abs error too large: {max_err}"

    print("KERNEL_OK")
</pallas_src>

<mosaic_0001>
module attributes {stable_mosaic.version = 11 : i64} {
  func.func @_sage_conv_kernel(%arg0: i32, %arg1: i32, %arg2: memref<256x128xbf16, #tpu.memory_space<vmem>>, %arg3: memref<128x128xbf16, #tpu.memory_space<vmem>>, %arg4: memref<256x128xbf16, #tpu.memory_space<vmem>>, %arg5: memref<256x128xbf16, #tpu.memory_space<vmem>>, %arg6: memref<1x128xf32, #tpu.memory_space<vmem>>, %arg7: memref<256x128xbf16, #tpu.memory_space<vmem>>, %arg8: memref<256x128xf32, #tpu.memory_space<vmem>>) attributes {dimension_semantics = [#tpu.dimension_semantics<parallel>, #tpu.dimension_semantics<arbitrary>], iteration_bounds = array<i64: 1, 2>, scalar_prefetch = 0 : i64, scratch_operands = 1 : i64, tpu.core_type = #tpu.core_type<tc>, window_params = [{transform_indices = @transform_0, window_bounds = array<i64: 256, 128>}, {transform_indices = @transform_1, window_bounds = array<i64: 128, 128>}, {transform_indices = @transform_2, window_bounds = array<i64: 256, 128>}, {pipeline_mode = #tpu.pipeline_mode<synchronous>, transform_indices = @transform_3, window_bounds = array<i64: 256, 128>}, {pipeline_mode = #tpu.pipeline_mode<synchronous>, transform_indices = @transform_4, window_bounds = array<i64: 1, 128>}, {transform_indices = @transform_5, window_bounds = array<i64: 256, 128>}]} {
    %c0_i32 = arith.constant 0 : i32
    %0 = arith.cmpi eq, %arg1, %c0_i32 : i32
    %1 = arith.extui %0 : i1 to i32
    %c0_i32_0 = arith.constant 0 : i32
    %2 = arith.cmpi ne, %1, %c0_i32_0 : i32
    scf.if %2 {
      %cst_9 = arith.constant 0.000000e+00 : f32
      %12 = vector.broadcast %cst_9 : f32 to vector<256x128xf32>
      %c0_10 = arith.constant 0 : index
      %c0_11 = arith.constant 0 : index
      %13 = vector.load %arg8[%c0_10, %c0_11] : memref<256x128xf32, #tpu.memory_space<vmem>>, vector<256x128xf32>
      tpu.vector_store %arg8[%c0_10, %c0_11], %12 {strides = array<i32>} : memref<256x128xf32, #tpu.memory_space<vmem>>, vector<256x128xf32>,
    } else {
    }
    %c0 = arith.constant 0 : index
    %c0_1 = arith.constant 0 : index
    %3 = vector.load %arg8[%c0, %c0_1] : memref<256x128xf32, #tpu.memory_space<vmem>>, vector<256x128xf32>
    %c0_2 = arith.constant 0 : index
    %c0_3 = arith.constant 0 : index
    %4 = vector.load %arg2[%c0_2, %c0_3] : memref<256x128xbf16, #tpu.memory_space<vmem>>, vector<256x128xbf16>
    %c0_4 = arith.constant 0 : index
    %c0_5 = arith.constant 0 : index
    %5 = vector.load %arg3[%c0_4, %c0_5] : memref<128x128xbf16, #tpu.memory_space<vmem>>, vector<128x128xbf16>
    %cst = arith.constant dense<0.000000e+00> : vector<256x128xf32>
    %6 = tpu.matmul %4, %5, %cst {dimension_numbers = #tpu.dot_dimension_numbers<[1], [0], [0], [1], [0, 0, 1, 1], [], []>} : vector<256x128xbf16>, vector<128x128xbf16>, vector<256x128xf32> -> vector<256x128xf32>
    %7 = arith.addf %3, %6 : vector<256x128xf32>
    %c0_6 = arith.constant 0 : index
    %c0_7 = arith.constant 0 : index
    %8 = vector.load %arg8[%c0_6, %c0_7] : memref<256x128xf32, #tpu.memory_space<vmem>>, vector<256x128xf32>
    tpu.vector_store %arg8[%c0_6, %c0_7], %7 {strides = array<i32>} : memref<256x128xf32, #tpu.memory_space<vmem>>, vector<256x128xf32>,
    %c1_i32 = arith.constant 1 : i32
    %9 = arith.cmpi eq, %arg1, %c1_i32 : i32
    %10 = arith.extui %9 : i1 to i32
    %c0_i32_8 = arith.constant 0 : i32
    %11 = arith.cmpi ne, %10, %c0_i32_8 : i32
    scf.if %11 {
      %c0_9 = arith.constant 0 : index
      %c0_10 = arith.constant 0 : index
      %12 = vector.load %arg8[%c0_9, %c0_10] : memref<256x128xf32, #tpu.memory_space<vmem>>, vector<256x128xf32>
      %13 = arith.truncf %12 : vector<256x128xf32> to vector<256x128xbf16>
      %c0_11 = arith.constant 0 : index
      %c0_12 = arith.constant 0 : index
      %14 = vector.load %arg4[%c0_11, %c0_12] : memref<256x128xbf16, #tpu.memory_space<vmem>>, vector<256x128xbf16>
      %15 = tpu.concatenate %13, %14 in 1 : vector<256x128xbf16>, vector<256x128xbf16> -> vector<256x256xbf16>
      %c0_13 = arith.constant 0 : index
      %c0_14 = arith.constant 0 : index
      %16 = vector.load %arg5[%c0_13, %c0_14] : memref<256x128xbf16, #tpu.memory_space<vmem>>, vector<256x128xbf16>
      %cst_15 = arith.constant dense<0.000000e+00> : vector<256x128xf32>
      %17 = tpu.matmul %15, %16, %cst_15 {dimension_numbers = #tpu.dot_dimension_numbers<[1], [0], [0], [1], [0, 0, 1, 1], [], []>} : vector<256x256xbf16>, vector<256x128xbf16>, vector<256x128xf32> -> vector<256x128xf32>
      %c0_16 = arith.constant 0 : index
      %c0_17 = arith.constant 0 : index
      %18 = vector.load %arg6[%c0_16, %c0_17] : memref<1x128xf32, #tpu.memory_space<vmem>>, vector<1x128xf32>
      %19 = vector.broadcast %18 : vector<1x128xf32> to vector<256x128xf32>
      %20 = arith.addf %17, %19 : vector<256x128xf32>
      %cst_18 = arith.constant 0.000000e+00 : f32
      %21 = vector.broadcast %cst_18 : f32 to vector<256x128xf32>
      %22 = arith.maximumf %20, %21 : vector<256x128xf32>
      %23 = arith.truncf %22 : vector<256x128xf32> to vector<256x128xbf16>
      %c0_19 = arith.constant 0 : index
      %c0_20 = arith.constant 0 : index
      %24 = vector.load %arg7[%c0_19, %c0_20] : memref<256x128xbf16, #tpu.memory_space<vmem>>, vector<256x128xbf16>
      tpu.vector_store %arg7[%c0_19, %c0_20], %23 {strides = array<i32>} : memref<256x128xbf16, #tpu.memory_space<vmem>>, vector<256x128xbf16>,
    } else {
    }
    return
  }
  func.func @transform_0(%arg0: i32, %arg1: i32) -> (i32, i32) {
    %c0_i32 = arith.constant 0 : i32
    return %arg0, %arg1 : i32, i32
  }
  func.func @transform_1(%arg0: i32, %arg1: i32) -> (i32, i32) {
    %c0_i32 = arith.constant 0 : i32
    %c0_i32_0 = arith.constant 0 : i32
    return %arg1, %c0_i32 : i32, i32
  }
  func.func @transform_2(%arg0: i32, %arg1: i32) -> (i32, i32) {
    %c0_i32 = arith.constant 0 : i32
    %c0_i32_0 = arith.constant 0 : i32
    return %arg0, %c0_i32 : i32, i32
  }
  func.func @transform_3(%arg0: i32, %arg1: i32) -> (i32, i32) {
    %c0_i32 = arith.constant 0 : i32
    %c0_i32_0 = arith.constant 0 : i32
    %c0_i32_1 = arith.constant 0 : i32
    return %c0_i32, %c0_i32_0 : i32, i32
  }
  func.func @transform_4(%arg0: i32, %arg1: i32) -> (i32, i32) {
    %c0_i32 = arith.constant 0 : i32
    %c0_i32_0 = arith.constant 0 : i32
    %c0_i32_1 = arith.constant 0 : i32
    return %c0_i32, %c0_i32_0 : i32, i32
  }
  func.func @transform_5(%arg0: i32, %arg1: i32) -> (i32, i32) {
    %c0_i32 = arith.constant 0 : i32
    %c0_i32_0 = arith.constant 0 : i32
    return %arg0, %c0_i32 : i32, i32
  }
}

module attributes {stable_mosaic.version = 11 : i64} {
  func.func @_sage_conv_kernel(%arg0: i32, %arg1: i32, %arg2: memref<256x128xbf16, #tpu.memory_space<vmem>>, %arg3: memref<128x128xbf16, #tpu.memory_space<vmem>>, %arg4: memref<256x128xbf16, #tpu.memory_space<vmem>>, %arg5: memref<256x128xbf16, #tpu.memory_space<vmem>>, %arg6: memref<1x128xf32, #tpu.memory_space<vmem>>, %arg7: memref<256x128xf32, #tpu.memory_space<vmem>>, %arg8: memref<256x128xf32, #tpu.memory_space<vmem>>) attributes {dimension_semantics = [#tpu.dimension_semantics<parallel>, #tpu.dimension_semantics<arbitrary>], iteration_bounds = array<i64: 1, 2>, scalar_prefetch = 0 : i64, scratch_operands = 1 : i64, tpu.core_type = #tpu.core_type<tc>, window_params = [{transform_indices = @transform_0, window_bounds = array<i64: 256, 128>}, {transform_indices = @transform_1, window_bounds = array<i64: 128, 128>}, {transform_indices = @transform_2, window_bounds = array<i64: 256, 128>}, {pipeline_mode = #tpu.pipeline_mode<synchronous>, transform_indices = @transform_3, window_bounds = array<i64: 256, 128>}, {pipeline_mode = #tpu.pipeline_mode<synchronous>, transform_indices = @transform_4, window_bounds = array<i64: 1, 128>}, {transform_indices = @transform_5, window_bounds = array<i64: 256, 128>}]} {
    %c0_i32 = arith.constant 0 : i32
    %0 = arith.cmpi eq, %arg1, %c0_i32 : i32
    %1 = arith.extui %0 : i1 to i32
    %c0_i32_0 = arith.constant 0 : i32
    %2 = arith.cmpi ne, %1, %c0_i32_0 : i32
    scf.if %2 {
      %cst_9 = arith.constant 0.000000e+00 : f32
      %12 = vector.broadcast %cst_9 : f32 to vector<256x128xf32>
      %c0_10 = arith.constant 0 : index
      %c0_11 = arith.constant 0 : index
      %13 = vector.load %arg8[%c0_10, %c0_11] : memref<256x128xf32, #tpu.memory_space<vmem>>, vector<256x128xf32>
      tpu.vector_store %arg8[%c0_10, %c0_11], %12 {strides = array<i32>} : memref<256x128xf32, #tpu.memory_space<vmem>>, vector<256x128xf32>,
    } else {
    }
    %c0 = arith.constant 0 : index
    %c0_1 = arith.constant 0 : index
    %3 = vector.load %arg8[%c0, %c0_1] : memref<256x128xf32, #tpu.memory_space<vmem>>, vector<256x128xf32>
    %c0_2 = arith.constant 0 : index
    %c0_3 = arith.constant 0 : index
    %4 = vector.load %arg2[%c0_2, %c0_3] : memref<256x128xbf16, #tpu.memory_space<vmem>>, vector<256x128xbf16>
    %c0_4 = arith.constant 0 : index
    %c0_5 = arith.constant 0 : index
    %5 = vector.load %arg3[%c0_4, %c0_5] : memref<128x128xbf16, #tpu.memory_space<vmem>>, vector<128x128xbf16>
    %cst = arith.constant dense<0.000000e+00> : vector<256x128xf32>
    %6 = tpu.matmul %4, %5, %cst {dimension_numbers = #tpu.dot_dimension_numbers<[1], [0], [0], [1], [0, 0, 1, 1], [], []>} : vector<256x128xbf16>, vector<128x128xbf16>, vector<256x128xf32> -> vector<256x128xf32>
    %7 = arith.addf %3, %6 : vector<256x128xf32>
    %c0_6 = arith.constant 0 : index
    %c0_7 = arith.constant 0 : index
    %8 = vector.load %arg8[%c0_6, %c0_7] : memref<256x128xf32, #tpu.memory_space<vmem>>, vector<256x128xf32>
    tpu.vector_store %arg8[%c0_6, %c0_7], %7 {strides = array<i32>} : memref<256x128xf32, #tpu.memory_space<vmem>>, vector<256x128xf32>,
    %c1_i32 = arith.constant 1 : i32
    %9 = arith.cmpi eq, %arg1, %c1_i32 : i32
    %10 = arith.extui %9 : i1 to i32
    %c0_i32_8 = arith.constant 0 : i32
    %11 = arith.cmpi ne, %10, %c0_i32_8 : i32
    scf.if %11 {
      %c0_9 = arith.constant 0 : index
      %c0_10 = arith.constant 0 : index
      %12 = vector.load %arg8[%c0_9, %c0_10] : memref<256x128xf32, #tpu.memory_space<vmem>>, vector<256x128xf32>
      %13 = arith.truncf %12 : vector<256x128xf32> to vector<256x128xbf16>
      %c0_11 = arith.constant 0 : index
      %c0_12 = arith.constant 0 : index
      %14 = vector.load %arg4[%c0_11, %c0_12] : memref<256x128xbf16, #tpu.memory_space<vmem>>, vector<256x128xbf16>
      %15 = tpu.concatenate %13, %14 in 1 : vector<256x128xbf16>, vector<256x128xbf16> -> vector<256x256xbf16>
      %c0_13 = arith.constant 0 : index
      %c0_14 = arith.constant 0 : index
      %16 = vector.load %arg5[%c0_13, %c0_14] : memref<256x128xbf16, #tpu.memory_space<vmem>>, vector<256x128xbf16>
      %cst_15 = arith.constant dense<0.000000e+00> : vector<256x128xf32>
      %17 = tpu.matmul %15, %16, %cst_15 {dimension_numbers = #tpu.dot_dimension_numbers<[1], [0], [0], [1], [0, 0, 1, 1], [], []>} : vector<256x256xbf16>, vector<256x128xbf16>, vector<256x128xf32> -> vector<256x128xf32>
      %c0_16 = arith.constant 0 : index
      %c0_17 = arith.constant 0 : index
      %18 = vector.load %arg6[%c0_16, %c0_17] : memref<1x128xf32, #tpu.memory_space<vmem>>, vector<1x128xf32>
      %19 = vector.broadcast %18 : vector<1x128xf32> to vector<256x128xf32>
      %20 = arith.addf %17, %19 : vector<256x128xf32>
      %c0_18 = arith.constant 0 : index
      %c0_19 = arith.constant 0 : index
      %21 = vector.load %arg7[%c0_18, %c0_19] : memref<256x128xf32, #tpu.memory_space<vmem>>, vector<256x128xf32>
      tpu.vector_store %arg7[%c0_18, %c0_19], %20 {strides = array<i32>} : memref<256x128xf32, #tpu.memory_space<vmem>>, vector<256x128xf32>,
    } else {
    }
    return
  }
  func.func @transform_0(%arg0: i32, %arg1: i32) -> (i32, i32) {
    %c0_i32 = arith.constant 0 : i32
    return %arg0, %arg1 : i32, i32
  }
  func.func @transform_1(%arg0: i32, %arg1: i32) -> (i32, i32) {
    %c0_i32 = arith.constant 0 : i32
    %c0_i32_0 = arith.constant 0 : i32
    return %arg1, %c0_i32 : i32, i32
  }
  func.func @transform_2(%arg0: i32, %arg1: i32) -> (i32, i32) {
    %c0_i32 = arith.constant 0 : i32
    %c0_i32_0 = arith.constant 0 : i32
    return %arg0, %c0_i32 : i32, i32
  }
  func.func @transform_3(%arg0: i32, %arg1: i32) -> (i32, i32) {
    %c0_i32 = arith.constant 0 : i32
    %c0_i32_0 = arith.constant 0 : i32
    %c0_i32_1 = arith.constant 0 : i32
    return %c0_i32, %c0_i32_0 : i32, i32
  }
  func.func @transform_4(%arg0: i32, %arg1: i32) -> (i32, i32) {
    %c0_i32 = arith.constant 0 : i32
    %c0_i32_0 = arith.constant 0 : i32
    %c0_i32_1 = arith.constant 0 : i32
    return %c0_i32, %c0_i32_0 : i32, i32
  }
  func.func @transform_5(%arg0: i32, %arg1: i32) -> (i32, i32) {
    %c0_i32 = arith.constant 0 : i32
    %c0_i32_0 = arith.constant 0 : i32
    return %arg0, %c0_i32 : i32, i32
  }
}

</mosaic_0001>

<bundles_post_ra>
// kernel: graphsage_forward.3
= control target key start
LH: loop header
LB: loop body
LE: loop exit
PB: predicated region body
PF: predicated region fallthrough
CT: control target
= control target key end

     0   :  { %s2048_s18 = smov 0   ;;  %s2050_s19 = smov 0   ;;  %s2440_s0 = inlined_call_operand.vmem [shape: bf16[256,256], index: 0, kind: input, shape index: {}]   ;;  %s2441_s1 = inlined_call_operand.vmem [shape: bf16[256,128], index: 1, kind: input, shape index: {}, may-alias: {1,2}]   ;;  %s2442_s2 = inlined_call_operand.vmem [shape: bf16[256,128], index: 2, kind: input, shape index: {}, may-alias: {1,2}]   ;;  %s2443_s3 = inlined_call_operand.vmem [shape: bf16[256,128], index: 3, kind: input, shape index: {}]   ;;  %s2444_s4 = inlined_call_operand.vmem [shape: f32[1,128], index: 4, kind: input, shape index: {}]   ;;  %s2445_s5 = inlined_call_operand.vmem [shape: f32[256,128], index: 5, kind: output, shape index: {}]  }
   0x1   :  { %s2052_s20 = smov 0   ;;  %s2054_s21 = smov 0  }
   0x2   :  { %s2056_s22 = smov 0  }
   0x3 LB: > { %s24_s23 = sadd.s32 1, %s2011_s21  ;;  %p43_p1 = scmp.ne.s32.totalorder %s2003_s19, %s1999_s18  ;;  %s2015_s22 = sphi %s2056_s22, %s15_s22   ;;  %s2011_s21 = sphi %s2054_s21, %s2449_s21   ;;  %s2007_s20 = sphi %s2052_s20, %s2448_s20   ;;  %s2003_s19 = sphi %s2050_s19, %s2447_s19   ;;  %s1999_s18 = sphi %s2048_s18, %s2446_s18  }
   0x4   : > { %p25_p0 = scmp.ge.s32.totalorder %s24_s23, 2  ;;  %p44_p2 = scmp.eq.s32.totalorder %s2015_s22, 0 }
   0x5   : > { %s36_s25 = sadd.s32 1, %s2003_s19  ;;  %p1602_p5 = scmp.ge.s32.totalorder %s2015_s22, 2 }
   0x6   : > { %s2451_s23 = smov (%p25_p0, %s24_s23), 0  ;;  %p45_p3 = por %p44_p2, %p43_p1 }
   0x7   : > { %s32_s24 = ssub.s32 %s2011_s21, %s2451_s23  ;;  %204 = sbr.rel (%p1602_p5) target bundleno = 48 (0x30), region = 28 }
   0x8   : > { %p34_p4 = scmp.eq.s32.totalorder %s32_s24, 0 }
   0xa   : > { %s2083_s26 = scalar_select %p34_p4, %s2003_s19, %s36_s25  }
   0xc   : > { %207 = sbr.rel (!%p45_p3) target bundleno = 48 (0x30), region = 32  ;;  %s209_s27 = sand.u32 (%p45_p3), 1, %s2003_s19  }
   0xd   : > { %s1604_s28 = sshll.u32 (%p45_p3), %s2011_s21, 2  ;;  %s1603_s29 = sshll.u32 (%p45_p3), %s209_s27, 7 }
   0xe   : > { %s2091_s7 = scalar_lea.vmem (%p45_p3), %s2440_s0, %s1604_s28  ;;  %s2095_s8 = scalar_lea.vmem (%p45_p3), [#allocation3], %s1603_s29 }
   0xf   : > { %v233_v0 = vld [vmem:[%s2091_s7] sm:$0xf] (%p45_p3)  ;;  %v235_v1 = vld [vmem:[%s2091_s7 + $0x8] sm:$0xf] (%p45_p3)  ;;  %v237_v2 = vld [vmem:[%s2091_s7 + $0x10] sm:$0xf] (%p45_p3) }
  0x10   : > { %234 = vst [vmem:[%s2095_s8] sm:$0xf] (%p45_p3), %v233_v0  ;;  %v239_v3 = vld [vmem:[%s2091_s7 + $0x18] sm:$0xf] (%p45_p3)  ;;  %v241_v4 = vld [vmem:[%s2091_s7 + $0x20] sm:$0xf] (%p45_p3) }
  0x11   : > { %236 = vst [vmem:[%s2095_s8 + $0x4] sm:$0xf] %v235_v1  ;;  %v243_v5 = vld [vmem:[%s2091_s7 + $0x28] sm:$0xf]  ;;  %v245_v6 = vld [vmem:[%s2091_s7 + $0x30] sm:$0xf] }
  0x12   : > { %238 = vst [vmem:[%s2095_s8 + $0x8] sm:$0xf] %v237_v2  ;;  %v247_v7 = vld [vmem:[%s2091_s7 + $0x38] sm:$0xf]  ;;  %v249_v8 = vld [vmem:[%s2091_s7 + $0x40] sm:$0xf] }
  0x13   : > { %240 = vst [vmem:[%s2095_s8 + $0xc] sm:$0xf] %v239_v3  ;;  %v251_v9 = vld [vmem:[%s2091_s7 + $0x48] sm:$0xf]  ;;  %v253_v10 = vld [vmem:[%s2091_s7 + $0x50] sm:$0xf] }
  0x14   : > { %242 = vst [vmem:[%s2095_s8 + $0x10] sm:$0xf] %v241_v4  ;;  %v255_v11 = vld [vmem:[%s2091_s7 + $0x58] sm:$0xf]  ;;  %v257_v12 = vld [vmem:[%s2091_s7 + $0x60] sm:$0xf] }
  0x15   : > { %244 = vst [vmem:[%s2095_s8 + $0x14] sm:$0xf] %v243_v5  ;;  %v259_v13 = vld [vmem:[%s2091_s7 + $0x68] sm:$0xf]  ;;  %v261_v14 = vld [vmem:[%s2091_s7 + $0x70] sm:$0xf] }
  0x16   : > { %246 = vst [vmem:[%s2095_s8 + $0x18] sm:$0xf] %v245_v6  ;;  %v263_v15 = vld [vmem:[%s2091_s7 + $0x78] sm:$0xf]  ;;  %v265_v16 = vld [vmem:[%s2091_s7 + $0x80] sm:$0xf] }
  0x17   : > { %248 = vst [vmem:[%s2095_s8 + $0x1c] sm:$0xf] %v247_v7  ;;  %v267_v17 = vld [vmem:[%s2091_s7 + $0x88] sm:$0xf]  ;;  %v269_v18 = vld [vmem:[%s2091_s7 + $0x90] sm:$0xf] }
  0x18   : > { %250 = vst [vmem:[%s2095_s8 + $0x20] sm:$0xf] %v249_v8  ;;  %v271_v19 = vld [vmem:[%s2091_s7 + $0x98] sm:$0xf]  ;;  %v273_v20 = vld [vmem:[%s2091_s7 + $0xa0] sm:$0xf] }
  0x19   : > { %252 = vst [vmem:[%s2095_s8 + $0x24] sm:$0xf] %v251_v9  ;;  %v275_v21 = vld [vmem:[%s2091_s7 + $0xa8] sm:$0xf]  ;;  %v277_v22 = vld [vmem:[%s2091_s7 + $0xb0] sm:$0xf] }
  0x1a   : > { %254 = vst [vmem:[%s2095_s8 + $0x28] sm:$0xf] %v253_v10  ;;  %v279_v23 = vld [vmem:[%s2091_s7 + $0xb8] sm:$0xf]  ;;  %v281_v24 = vld [vmem:[%s2091_s7 + $0xc0] sm:$0xf] }
  0x1b   : > { %256 = vst [vmem:[%s2095_s8 + $0x2c] sm:$0xf] %v255_v11  ;;  %v283_v25 = vld [vmem:[%s2091_s7 + $0xc8] sm:$0xf]  ;;  %v285_v26 = vld [vmem:[%s2091_s7 + $0xd0] sm:$0xf] }
  0x1c   : > { %258 = vst [vmem:[%s2095_s8 + $0x30] sm:$0xf] %v257_v12  ;;  %v287_v27 = vld [vmem:[%s2091_s7 + $0xd8] sm:$0xf]  ;;  %v289_v28 = vld [vmem:[%s2091_s7 + $0xe0] sm:$0xf] }
  0x1d   : > { %260 = vst [vmem:[%s2095_s8 + $0x34] sm:$0xf] %v259_v13  ;;  %v291_v29 = vld [vmem:[%s2091_s7 + $0xe8] sm:$0xf]  ;;  %v293_v30 = vld [vmem:[%s2091_s7 + $0xf0] sm:$0xf] }
  0x1e   : > { %262 = vst [vmem:[%s2095_s8 + $0x38] sm:$0xf] %v261_v14  ;;  %v295_v31 = vld [vmem:[%s2091_s7 + $0xf8] sm:$0xf] }
  0x1f   : > { %264 = vst [vmem:[%s2095_s8 + $0x3c] sm:$0xf] %v263_v15 }
  0x20   : > { %266 = vst [vmem:[%s2095_s8 + $0x40] sm:$0xf] %v265_v16 }
  0x21   : > { %268 = vst [vmem:[%s2095_s8 + $0x44] sm:$0xf] %v267_v17 }
  0x22   : > { %270 = vst [vmem:[%s2095_s8 + $0x48] sm:$0xf] %v269_v18 }
  0x23   : > { %272 = vst [vmem:[%s2095_s8 + $0x4c] sm:$0xf] %v271_v19 }
  0x24   : > { %274 = vst [vmem:[%s2095_s8 + $0x50] sm:$0xf] %v273_v20 }
  0x25   : > { %276 = vst [vmem:[%s2095_s8 + $0x54] sm:$0xf] %v275_v21 }
  0x26   : > { %278 = vst [vmem:[%s2095_s8 + $0x58] sm:$0xf] %v277_v22 }
  0x27   : > { %280 = vst [vmem:[%s2095_s8 + $0x5c] sm:$0xf] %v279_v23 }
  0x28   : > { %282 = vst [vmem:[%s2095_s8 + $0x60] sm:$0xf] %v281_v24 }
  0x29   : > { %284 = vst [vmem:[%s2095_s8 + $0x64] sm:$0xf] %v283_v25 }
  0x2a   : > { %286 = vst [vmem:[%s2095_s8 + $0x68] sm:$0xf] %v285_v26 }
  0x2b   : > { %288 = vst [vmem:[%s2095_s8 + $0x6c] sm:$0xf] %v287_v27 }
  0x2c   : > { %290 = vst [vmem:[%s2095_s8 + $0x70] sm:$0xf] %v289_v28 }
  0x2d   : > { %292 = vst [vmem:[%s2095_s8 + $0x74] sm:$0xf] %v291_v29 }
  0x2e   : > { %294 = vst [vmem:[%s2095_s8 + $0x78] sm:$0xf] %v293_v30 }
  0x2f   : > { %296 = vst [vmem:[%s2095_s8 + $0x7c] sm:$0xf] %v295_v31 }
  0x30 PF: > { %p1605_p6 = scmp.ge.s32.totalorder %s2015_s22, 1  ;;  %p392_p7 = scmp.lt.s32.totalorder %s2015_s22, 3 }
  0x32   : > { %p393_p8 = pnand %p1605_p6, %p392_p7 }
  0x33   : > { %s399_s9 = sand.u32 (!%p393_p8), 1, %s1999_s18   ;;  %s1607_s10 = sshll.u32 (!%p393_p8), %s2007_s20, 4 }
  0x34   : > { %396 = sbr.rel (%p393_p8) target bundleno = 609 (0x261), region = 77  ;;  %s1606_s11 = sshll.u32 (!%p393_p8), %s399_s9, 7 }
  0x35   : > { %p438_p9 = scmp.lt.s32.totalorder (!%p393_p8), %s1607_s10, 31  ;;  %s2168_s16 = scalar_lea.vmem (!%p393_p8), [#allocation3], %s1606_s11 }
  0x36   : > { %p1609_p10 = scmp.ne.s32.totalorder (!%p393_p8), %s2007_s20, 0 }
  0x39   : > { %s2453_s10 = smov (!%p438_p9, %s1607_s10), 31  ;;  %458 = sbr.rel (%p1609_p10) target bundleno = 95 (0x5f), region = 85 }
  0x3a   : > { %s1608_s12 = sshll.u32 %s2453_s10, 2 }
  0x3b   : > { %s2166_s15 = scalar_lea.vmem %s2441_s1, %s1608_s12 }
  0x3e   : > { %v2017_v32 = vmov 0.0  }
  0x3f   : > { %459 = vst [vmem:[#allocation2 + $0xb0] sm:$0xff] %v2017_v32 }
  0x40   : > { %460 = vst [vmem:[#allocation2] sm:$0xff] %v2017_v32 }
  0x41   : > { %461 = vst [vmem:[#allocation2 + $0xd8] sm:$0xff] %v2017_v32 }
  0x42   : > { %462 = vst [vmem:[#allocation2 + $0x18] sm:$0xff] %v2017_v32 }
  0x43   : > { %463 = vst [vmem:[#allocation2 + $0x50] sm:$0xff] %v2017_v32 }
  0x44   : > { %464 = vst [vmem:[#allocation2 + $0x68] sm:$0xff] %v2017_v32 }
  0x45   : > { %465 = vst [vmem:[#allocation2 + $0x30] sm:$0xff] %v2017_v32 }
  0x46   : > { %466 = vst [vmem:[#allocation2 + $0x48] sm:$0xff] %v2017_v32 }
  0x47   : > { %467 = vst [vmem:[#allocation2 + $0x80] sm:$0xff] %v2017_v32 }
  0x48   : > { %468 = vst [vmem:[#allocation2 + $0x88] sm:$0xff] %v2017_v32 }
  0x49   : > { %469 = vst [vmem:[#allocation2 + $0xe8] sm:$0xff] %v2017_v32 }
  0x4a   : > { %470 = vst [vmem:[#allocation2 + $0xb8] sm:$0xff] %v2017_v32 }
  0x4b   : > { %471 = vst [vmem:[#allocation2 + $0x60] sm:$0xff] %v2017_v32 }
  0x4c   : > { %472 = vst [vmem:[#allocation2 + $0xf0] sm:$0xff] %v2017_v32 }
  0x4d   : > { %473 = vst [vmem:[#allocation2 + $0x8] sm:$0xff] %v2017_v32 }
  0x4e   : > { %474 = vst [vmem:[#allocation2 + $0x78] sm:$0xff] %v2017_v32 }
  0x4f   : > { %475 = vst [vmem:[#allocation2 + $0x38] sm:$0xff] %v2017_v32 }
  0x50   : > { %476 = vst [vmem:[#allocation2 + $0x58] sm:$0xff] %v2017_v32 }
  0x51   : > { %477 = vst [vmem:[#allocation2 + $0x40] sm:$0xff] %v2017_v32 }
  0x52   : > { %478 = vst [vmem:[#allocation2 + $0xc8] sm:$0xff] %v2017_v32 }
  0x53   : > { %479 = vst [vmem:[#allocation2 + $0xe0] sm:$0xff] %v2017_v32 }
  0x54   : > { %480 = vst [vmem:[#allocation2 + $0x90] sm:$0xff] %v2017_v32 }
  0x55   : > { %481 = vst [vmem:[#allocation2 + $0x70] sm:$0xff] %v2017_v32 }
  0x56   : > { %482 = vst [vmem:[#allocation2 + $0xc0] sm:$0xff] %v2017_v32 }
  0x57   : > { %483 = vst [vmem:[#allocation2 + $0xa8] sm:$0xff] %v2017_v32 }
  0x58   : > { %484 = vst [vmem:[#allocation2 + $0xd0] sm:$0xff] %v2017_v32 }
  0x59   : > { %485 = vst [vmem:[#allocation2 + $0x10] sm:$0xff] %v2017_v32 }
  0x5a   : > { %486 = vst [vmem:[#allocation2 + $0x28] sm:$0xff] %v2017_v32 }
  0x5b   : > { %487 = vst [vmem:[#allocation2 + $0xa0] sm:$0xff] %v2017_v32 }
  0x5c   : > { %488 = vst [vmem:[#allocation2 + $0xf8] sm:$0xff] %v2017_v32 }
  0x5d   : > { %489 = vst [vmem:[#allocation2 + $0x20] sm:$0xff] %v2017_v32 }
  0x5e   : > { %490 = vst [vmem:[#allocation2 + $0x98] sm:$0xff] %v2017_v32 }
  0x5f PF: > { %v1862_v33 = vld [vmem:[%s2166_s15 + $0x38] sm:$0xff]  ;;  %v1861_v34 = vld [vmem:[%s2166_s15 + $0x30] sm:$0xff]  ;;  %v1860_v35 = vld [vmem:[%s2166_s15 + $0x28] sm:$0xff]  ;;  %p1706_p11 = scmp.ne.s32.totalorder %s2007_s20, 1 }
  0x60   : > { %715 = vmatpush.bf16.msra.mxu0 %v1862_v33  ;;  %1895 = vmatpush.bf16.msra.mxu1 %v1862_v33  ;;  %v1859_v36 = vld [vmem:[%s2166_s15 + $0x20] sm:$0xff]  ;;  %v1858_v37 = vld [vmem:[%s2166_s15 + $0x18] sm:$0xff]  ;;  %v1857_v38 = vld [vmem:[%s2166_s15 + $0x10] sm:$0xff] }
  0x61   : > { %1896 = vmatpush.bf16.msra.mxu2 %v1862_v33  ;;  %1897 = vmatpush.bf16.msra.mxu3 %v1862_v33  ;;  %v1856_v39 = vld [vmem:[%s2166_s15 + $0x8] sm:$0xff]  ;;  %v1855_v40 = vld [vmem:[%s2166_s15] sm:$0xff]  ;;  %v1841_v49 = vld [vmem:[%s2168_s16 + $0x10] sm:$0xff] }
  0x62   : > { %v1839_v41 = vld [vmem:[%s2168_s16] sm:$0xff]  ;;  %v1840_v45 = vld [vmem:[%s2168_s16 + $0x8] sm:$0xff]  ;;  %v1845_v50 = vld [vmem:[%s2168_s16 + $0x30] sm:$0xff] }
  0x63   : > { %v1843_v42 = vld [vmem:[%s2168_s16 + $0x20] sm:$0xff]  ;;  %v1844_v46 = vld [vmem:[%s2168_s16 + $0x28] sm:$0xff]  ;;  %v1849_v51 = vld [vmem:[%s2168_s16 + $0x50] sm:$0xff] }
  0x64   : > { %716 = vmatpush.bf16.msra.mxu0 %v1861_v34  ;;  %1898 = vmatpush.bf16.msra.mxu1 %v1861_v34  ;;  %v1847_v43 = vld [vmem:[%s2168_s16 + $0x40] sm:$0xff]  ;;  %v1848_v47 = vld [vmem:[%s2168_s16 + $0x48] sm:$0xff]  ;;  %v1853_v52 = vld [vmem:[%s2168_s16 + $0x70] sm:$0xff] }
  0x65   : > { %1899 = vmatpush.bf16.msra.mxu2 %v1861_v34  ;;  %1900 = vmatpush.bf16.msra.mxu3 %v1861_v34  ;;  %v1851_v44 = vld [vmem:[%s2168_s16 + $0x60] sm:$0xff]  ;;  %v1852_v48 = vld [vmem:[%s2168_s16 + $0x68] sm:$0xff]  ;;  %v1842_v53 = vld [vmem:[%s2168_s16 + $0x18] sm:$0xff] }
  0x66   : > { %v1846_v54 = vld [vmem:[%s2168_s16 + $0x38] sm:$0xff]  ;;  %v491_v57 = vld [vmem:[#allocation2 + $0xb0] sm:$0xff]  ;;  %v499_v58 = vld [vmem:[#allocation2 + $0x80] sm:$0xff] }
  0x67   : > { %v1850_v55 = vld [vmem:[%s2168_s16 + $0x58] sm:$0xff]  ;;  %v515_v0 = vld [vmem:[#allocation2 + $0xa8] sm:$0xff]  ;;  %v492_v1 = vld [vmem:[#allocation2] sm:$0xff] }
  0x68   : > { %717 = vmatpush.bf16.msra.mxu0 %v1860_v35  ;;  %1901 = vmatpush.bf16.msra.mxu1 %v1860_v35  ;;  %v1854_v56 = vld [vmem:[%s2168_s16 + $0x78] sm:$0xff]  ;;  %v500_v2 = vld [vmem:[#allocation2 + $0x88] sm:$0xff]  ;;  %v516_v12 = vld [vmem:[#allocation2 + $0xd0] sm:$0xff] }
  0x69   : > { %1902 = vmatpush.bf16.msra.mxu2 %v1860_v35  ;;  %1903 = vmatpush.bf16.msra.mxu3 %v1860_v35  ;;  %v507_v63 = vld [vmem:[#allocation2 + $0x38] sm:$0xff]  ;;  %v501_v14 = vld [vmem:[#allocation2 + $0xe8] sm:$0xff]  ;;  %v509_v23 = vld [vmem:[#allocation2 + $0x40] sm:$0xff] }
  0x6a   : > { %v508_v11 = vld [vmem:[#allocation2 + $0x58] sm:$0xff]  ;;  %v517_v24 = vld [vmem:[#allocation2 + $0x10] sm:$0xff]  ;;  %v510_v35 = vld [vmem:[#allocation2 + $0xc8] sm:$0xff] }
  0x6b   : > { %v493_v13 = vld [vmem:[#allocation2 + $0xd8] sm:$0xff] }
  0x6c   : > { %718 = vmatpush.bf16.msra.mxu0 %v1859_v36  ;;  %1904 = vmatpush.bf16.msra.mxu1 %v1859_v36  ;;  %v494_v25 = vld [vmem:[#allocation2 + $0x18] sm:$0xff] }
  0x6d   : > { %1905 = vmatpush.bf16.msra.mxu2 %v1859_v36  ;;  %1906 = vmatpush.bf16.msra.mxu3 %v1859_v36  ;;  %v502_v26 = vld [vmem:[#allocation2 + $0xb8] sm:$0xff]  ;;  %v518_v36 = vld [vmem:[#allocation2 + $0x28] sm:$0xff] }
  0x70   : > { %719 = vmatpush.bf16.msra.mxu0 %v1858_v37  ;;  %1907 = vmatpush.bf16.msra.mxu1 %v1858_v37 }
  0x71   : > { %1908 = vmatpush.bf16.msra.mxu2 %v1858_v37  ;;  %1909 = vmatpush.bf16.msra.mxu3 %v1858_v37  ;;  %v495_v37 = vld [vmem:[#allocation2 + $0x50] sm:$0xff] }
  0x74   : > { %720 = vmatpush.bf16.msra.mxu0 %v1857_v38  ;;  %1910 = vmatpush.bf16.msra.mxu1 %v1857_v38 }
  0x75   : > { %1911 = vmatpush.bf16.msra.mxu2 %v1857_v38  ;;  %1912 = vmatpush.bf16.msra.mxu3 %v1857_v38  ;;  %v503_v38 = vld [vmem:[#allocation2 + $0x60] sm:$0xff] }
  0x78   : > { %721 = vmatpush.bf16.msra.mxu0 %v1856_v39  ;;  %1913 = vmatpush.bf16.msra.mxu1 %v1856_v39 }
  0x79   : > { %1914 = vmatpush.bf16.msra.mxu2 %v1856_v39  ;;  %1915 = vmatpush.bf16.msra.mxu3 %v1856_v39 }
  0x7c   : > { %722 = vmatpush.bf16.msra.mxu0 %v1855_v40  ;;  %1916 = vmatpush.bf16.msra.mxu1 %v1855_v40 }
  0x7d   : > { %1917 = vmatpush.bf16.msra.mxu2 %v1855_v40  ;;  %1918 = vmatpush.bf16.msra.mxu3 %v1855_v40 }
  0x7f   : > { %723 = vmatmul.bf16.vlgmr.msra.gmra.mxu0 %v1839_v41  ;;  %743 = vmatmul.bf16.vlgmr.msra.gmra.mxu1 %v1843_v42 }
  0x80   : > { %763 = vmatmul.bf16.vlgmr.msra.gmra.mxu2 %v1847_v43  ;;  %783 = vmatmul.bf16.vlgmr.msra.gmra.mxu3 %v1851_v44 }
  0x8f   : > { %728 = vmatmul.bf16.gmra.mxu0 %v1840_v45  ;;  %748 = vmatmul.bf16.gmra.mxu1 %v1844_v46 }
  0x90   : > { %768 = vmatmul.bf16.gmra.mxu2 %v1848_v47  ;;  %788 = vmatmul.bf16.gmra.mxu3 %v1852_v48  ;;  %v511_v47 = vld [vmem:[#allocation2 + $0xe0] sm:$0xff] }
  0x91   : > { %v519_v48 = vld [vmem:[#allocation2 + $0xa0] sm:$0xff] }
  0x9f   : > { %733 = vmatmul.bf16.gmra.mxu0 %v1841_v49  ;;  %753 = vmatmul.bf16.gmra.mxu1 %v1845_v50  ;;  %v496_v49 = vld [vmem:[#allocation2 + $0x68] sm:$0xff]  ;;  %v504_v50 = vld [vmem:[#allocation2 + $0xf0] sm:$0xff] }
  0xa0   : > { %773 = vmatmul.bf16.gmra.mxu2 %v1849_v51  ;;  %793 = vmatmul.bf16.gmra.mxu3 %v1853_v52 }
  0xaf   : > { %738 = vmatmul.bf16.gmra.mxu0 %v1842_v53  ;;  %758 = vmatmul.bf16.gmra.mxu1 %v1846_v54 }
  0xb0   : > { %778 = vmatmul.bf16.gmra.mxu2 %v1850_v55  ;;  %798 = vmatmul.bf16.gmra.mxu3 %v1854_v56 }
  0xfc   : > { %v724_v59 = vpop.f32.mrf.mxu0  ;;  %v744_v60 = vpop.f32.mrf.mxu1 }
  0xfd   : > { %v804_v61 = vadd.f32 %v724_v59, %v491_v57  ;;  %v812_v62 = vadd.f32 %v744_v60, %v499_v58  ;;  %v512_v59 = vld [vmem:[#allocation2 + $0x90] sm:$0xff]  ;;  %v520_v60 = vld [vmem:[#allocation2 + $0xf8] sm:$0xff] }
  0xff   : > { %836 = vst [vmem:[#allocation2 + $0xb0] sm:$0xff] %v804_v61  ;;  %v497_v61 = vld [vmem:[#allocation2 + $0x30] sm:$0xff] }
 0x100   : > { %844 = vst [vmem:[#allocation2 + $0x80] sm:$0xff] %v812_v62  ;;  %v505_v62 = vld [vmem:[#allocation2 + $0x8] sm:$0xff] }
 0x103   : > { %v764_v3 = vpop.f32.mrf.mxu2  ;;  %v784_v4 = vpop.f32.mrf.mxu3 }
 0x104   : > { %v820_v5 = vadd.f32 %v764_v3, %v507_v63  ;;  %v828_v6 = vadd.f32 %v784_v4, %v515_v0  ;;  %v726_v7 = vpop.f32.mrf.mxu0  ;;  %v746_v8 = vpop.f32.mrf.mxu1 }
 0x105   : > { %v805_v9 = vadd.f32 %v726_v7, %v492_v1  ;;  %v813_v10 = vadd.f32 %v746_v8, %v500_v2  ;;  %v513_v7 = vld [vmem:[#allocation2 + $0x70] sm:$0xff]  ;;  %v521_v8 = vld [vmem:[#allocation2 + $0x20] sm:$0xff] }
 0x106   : > { %852 = vst [vmem:[#allocation2 + $0x38] sm:$0xff] %v820_v5 }
 0x107   : > { %860 = vst [vmem:[#allocation2 + $0xa8] sm:$0xff] %v828_v6 }
 0x108   : > { %837 = vst [vmem:[#allocation2] sm:$0xff] %v805_v9  ;;  %v498_v9 = vld [vmem:[#allocation2 + $0x48] sm:$0xff] }
 0x109   : > { %845 = vst [vmem:[#allocation2 + $0x88] sm:$0xff] %v813_v10  ;;  %v506_v10 = vld [vmem:[#allocation2 + $0x78] sm:$0xff] }
 0x10b   : > { %v766_v15 = vpop.f32.mrf.mxu2  ;;  %v786_v16 = vpop.f32.mrf.mxu3 }
 0x10c   : > { %v821_v17 = vadd.f32 %v766_v15, %v508_v11  ;;  %v829_v18 = vadd.f32 %v786_v16, %v516_v12  ;;  %v729_v19 = vpop.f32.mrf.mxu0  ;;  %v749_v20 = vpop.f32.mrf.mxu1 }
 0x10d   : > { %v806_v21 = vadd.f32 %v729_v19, %v493_v13  ;;  %v814_v22 = vadd.f32 %v749_v20, %v501_v14  ;;  %v514_v19 = vld [vmem:[#allocation2 + $0xc0] sm:$0xff]  ;;  %v522_v20 = vld [vmem:[#allocation2 + $0x98] sm:$0xff] }
 0x10e   : > { %853 = vst [vmem:[#allocation2 + $0x58] sm:$0xff] %v821_v17 }
 0x10f   : > { %861 = vst [vmem:[#allocation2 + $0xd0] sm:$0xff] %v829_v18 }
 0x110   : > { %838 = vst [vmem:[#allocation2 + $0xd8] sm:$0xff] %v806_v21 }
 0x111   : > { %846 = vst [vmem:[#allocation2 + $0xe8] sm:$0xff] %v814_v22 }
 0x113   : > { %v769_v27 = vpop.f32.mrf.mxu2  ;;  %v789_v28 = vpop.f32.mrf.mxu3 }
 0x114   : > { %v822_v29 = vadd.f32 %v769_v27, %v509_v23  ;;  %v830_v30 = vadd.f32 %v789_v28, %v517_v24  ;;  %v731_v31 = vpop.f32.mrf.mxu0  ;;  %v751_v32 = vpop.f32.mrf.mxu1 }
 0x115   : > { %v807_v33 = vadd.f32 %v731_v31, %v494_v25  ;;  %v815_v34 = vadd.f32 %v751_v32, %v502_v26 }
 0x116   : > { %854 = vst [vmem:[#allocation2 + $0x40] sm:$0xff] %v822_v29 }
 0x117   : > { %862 = vst [vmem:[#allocation2 + $0x10] sm:$0xff] %v830_v30 }
 0x118   : > { %839 = vst [vmem:[#allocation2 + $0x18] sm:$0xff] %v807_v33 }
 0x119   : > { %847 = vst [vmem:[#allocation2 + $0xb8] sm:$0xff] %v815_v34 }
 0x11b   : > { %v771_v39 = vpop.f32.mrf.mxu2  ;;  %v791_v40 = vpop.f32.mrf.mxu3 }
 0x11c   : > { %v823_v41 = vadd.f32 %v771_v39, %v510_v35  ;;  %v831_v42 = vadd.f32 %v791_v40, %v518_v36  ;;  %v734_v43 = vpop.f32.mrf.mxu0  ;;  %v754_v44 = vpop.f32.mrf.mxu1 }
 0x11d   : > { %v808_v45 = vadd.f32 %v734_v43, %v495_v37  ;;  %v816_v46 = vadd.f32 %v754_v44, %v503_v38 }
 0x11e   : > { %855 = vst [vmem:[#allocation2 + $0xc8] sm:$0xff] %v823_v41 }
 0x11f   : > { %863 = vst [vmem:[#allocation2 + $0x28] sm:$0xff] %v831_v42 }
 0x120   : > { %840 = vst [vmem:[#allocation2 + $0x50] sm:$0xff] %v808_v45 }
 0x121   : > { %848 = vst [vmem:[#allocation2 + $0x60] sm:$0xff] %v816_v46 }
 0x123   : > { %v774_v51 = vpop.f32.mrf.mxu2  ;;  %v794_v52 = vpop.f32.mrf.mxu3 }
 0x124   : > { %v824_v53 = vadd.f32 %v774_v51, %v511_v47  ;;  %v832_v54 = vadd.f32 %v794_v52, %v519_v48  ;;  %v736_v55 = vpop.f32.mrf.mxu0  ;;  %v756_v56 = vpop.f32.mrf.mxu1 }
 0x125   : > { %v809_v57 = vadd.f32 %v736_v55, %v496_v49  ;;  %v817_v58 = vadd.f32 %v756_v56, %v504_v50 }
 0x126   : > { %856 = vst [vmem:[#allocation2 + $0xe0] sm:$0xff] %v824_v53 }
 0x127   : > { %864 = vst [vmem:[#allocation2 + $0xa0] sm:$0xff] %v832_v54 }
 0x128   : > { %841 = vst [vmem:[#allocation2 + $0x68] sm:$0xff] %v809_v57 }
 0x129   : > { %849 = vst [vmem:[#allocation2 + $0xf0] sm:$0xff] %v817_v58 }
 0x12b   : > { %v776_v63 = vpop.f32.mrf.mxu2  ;;  %v796_v0 = vpop.f32.mrf.mxu3 }
 0x12c   : > { %v825_v1 = vadd.f32 %v776_v63, %v512_v59  ;;  %v833_v2 = vadd.f32 %v796_v0, %v520_v60  ;;  %v739_v3 = vpop.f32.mrf.mxu0  ;;  %v759_v4 = vpop.f32.mrf.mxu1 }
 0x12d   : > { %v810_v5 = vadd.f32 %v739_v3, %v497_v61  ;;  %v818_v6 = vadd.f32 %v759_v4, %v505_v62 }
 0x12e   : > { %857 = vst [vmem:[#allocation2 + $0x90] sm:$0xff] %v825_v1 }
 0x12f   : > { %865 = vst [vmem:[#allocation2 + $0xf8] sm:$0xff] %v833_v2 }
 0x130   : > { %842 = vst [vmem:[#allocation2 + $0x30] sm:$0xff] %v810_v5 }
 0x131   : > { %850 = vst [vmem:[#allocation2 + $0x8] sm:$0xff] %v818_v6 }
 0x133   : > { %v779_v11 = vpop.f32.mrf.mxu2  ;;  %v799_v12 = vpop.f32.mrf.mxu3 }
 0x134   : > { %v826_v13 = vadd.f32 %v779_v11, %v513_v7  ;;  %v834_v14 = vadd.f32 %v799_v12, %v521_v8  ;;  %v741_v15 = vpop.f32.mrf.mxu0  ;;  %v761_v16 = vpop.f32.mrf.mxu1 }
 0x135   : > { %v811_v17 = vadd.f32 %v741_v15, %v498_v9  ;;  %v819_v18 = vadd.f32 %v761_v16, %v506_v10 }
 0x136   : > { %858 = vst [vmem:[#allocation2 + $0x70] sm:$0xff] %v826_v13 }
 0x137   : > { %866 = vst [vmem:[#allocation2 + $0x20] sm:$0xff] %v834_v14 }
 0x138   : > { %843 = vst [vmem:[#allocation2 + $0x48] sm:$0xff] %v811_v17 }
 0x139   : > { %851 = vst [vmem:[#allocation2 + $0x78] sm:$0xff] %v819_v18 }
 0x13b   : > { %v781_v21 = vpop.f32.mrf.mxu2  ;;  %v801_v22 = vpop.f32.mrf.mxu3  ;;  %871 = sbr.rel (%p1706_p11) target bundleno = 609 (0x261), region = 89 }
 0x13c   : > { %v827_v23 = vadd.f32 %v781_v21, %v514_v19  ;;  %v835_v24 = vadd.f32 %v801_v22, %v522_v20 }
 0x13e   : > { %859 = vst [vmem:[#allocation2 + $0xc0] sm:$0xff] %v827_v23 }
 0x13f   : > { %867 = vst [vmem:[#allocation2 + $0x98] sm:$0xff] %v835_v24 }
 0x140   : > { %v1886_v25 = vld [vmem:[%s2443_s3 + $0x38] sm:$0xff]  ;;  %v1885_v27 = vld [vmem:[%s2443_s3 + $0x30] sm:$0xff]  ;;  %v1884_v29 = vld [vmem:[%s2443_s3 + $0x28] sm:$0xff] }
 0x141   : > { %v1894_v26 = vld [vmem:[%s2443_s3 + $0x78] sm:$0xff]  ;;  %1292 = vmatpush.bf16.msra.mxu0 %v1886_v25  ;;  %1919 = vmatpush.bf16.msra.mxu2 %v1886_v25  ;;  %v1893_v28 = vld [vmem:[%s2443_s3 + $0x70] sm:$0xff]  ;;  %v1892_v30 = vld [vmem:[%s2443_s3 + $0x68] sm:$0xff] }
 0x142   : > { %1381 = vmatpush.bf16.msra.mxu1 %v1894_v26  ;;  %1927 = vmatpush.bf16.msra.mxu3 %v1894_v26  ;;  %v1883_v31 = vld [vmem:[%s2443_s3 + $0x20] sm:$0xff]  ;;  %v1882_v33 = vld [vmem:[%s2443_s3 + $0x18] sm:$0xff]  ;;  %v1881_v35 = vld [vmem:[%s2443_s3 + $0x10] sm:$0xff] }
 0x143   : > { %v1891_v32 = vld [vmem:[%s2443_s3 + $0x60] sm:$0xff]  ;;  %v1890_v34 = vld [vmem:[%s2443_s3 + $0x58] sm:$0xff]  ;;  %v872_v36 = vld [vmem:[#allocation2 + $0xb0] sm:$0xff] }
 0x144   : > { %v873_v37 = vld [vmem:[#allocation2] sm:$0xff]  ;;  %v888_v38 = vld [vmem:[#allocation2 + $0x38] sm:$0xff]  ;;  %v1889_v40 = vld [vmem:[%s2443_s3 + $0x50] sm:$0xff]  ;;  %v904_v41 = vpack.c.bf16 %v872_v36, %v872_v36 }
 0x145   : > { %1293 = vmatpush.bf16.msra.mxu0 %v1885_v27  ;;  %1920 = vmatpush.bf16.msra.mxu2 %v1885_v27  ;;  %v889_v39 = vld [vmem:[#allocation2 + $0x58] sm:$0xff]  ;;  %v905_v42 = vpack.c.bf16 %v873_v37, %v873_v37  ;;  %v920_v43 = vpack.c.bf16 %v888_v38, %v888_v38  ;;  %v1880_v45 = vld [vmem:[%s2443_s3 + $0x8] sm:$0xff]  ;;  %v1879_v51 = vld [vmem:[%s2443_s3] sm:$0xff] }
 0x146   : > { %1382 = vmatpush.bf16.msra.mxu1 %v1893_v28  ;;  %1928 = vmatpush.bf16.msra.mxu3 %v1893_v28  ;;  %v921_v44 = vpack.c.bf16 %v889_v39, %v889_v39  ;;  %v1888_v46 = vld [vmem:[%s2443_s3 + $0x48] sm:$0xff]  ;;  %v1000_v47 = vunpack.c.l.b16 %v904_v41  ;;  %v1887_v52 = vld [vmem:[%s2443_s3 + $0x40] sm:$0xff]  ;;  %v874_v57 = vld [vmem:[#allocation2 + $0xd8] sm:$0xff] }
 0x147   : > { %v1001_v48 = vunpack.c.l.b16 %v905_v42  ;;  %v1016_v49 = vunpack.c.l.b16 %v920_v43  ;;  %v1863_v55 = vld [vmem:[%s2442_s2] sm:$0xff]  ;;  %v875_v58 = vld [vmem:[#allocation2 + $0x18] sm:$0xff]  ;;  %v891_v60 = vld [vmem:[#allocation2 + $0xc8] sm:$0xff]  ;;  %v906_v61 = vpack.c.bf16 %v874_v57, %v874_v57 }
 0x148   : > { %v1017_v50 = vunpack.c.l.b16 %v921_v44  ;;  %v1871_v56 = vld [vmem:[%s2442_s2 + $0x40] sm:$0xff]  ;;  %v907_v62 = vpack.c.bf16 %v875_v58, %v875_v58  ;;  %v923_v0 = vpack.c.bf16 %v891_v60, %v891_v60  ;;  %v1864_v7 = vld [vmem:[%s2442_s2 + $0x8] sm:$0xff]  ;;  %v876_v9 = vld [vmem:[#allocation2 + $0x50] sm:$0xff] }
 0x149   : > { %1294 = vmatpush.bf16.msra.mxu0 %v1884_v29  ;;  %1921 = vmatpush.bf16.msra.mxu2 %v1884_v29  ;;  %v1032_v53 = vpack.c.b16 %v1001_v48, %v1000_v47  ;;  %v890_v59 = vld [vmem:[#allocation2 + $0x40] sm:$0xff]  ;;  %v1002_v1 = vunpack.c.l.b16 %v906_v61  ;;  %v1872_v8 = vld [vmem:[%s2442_s2 + $0x48] sm:$0xff]  ;;  %v893_v12 = vld [vmem:[#allocation2 + $0x90] sm:$0xff]  ;;  %v908_v13 = vpack.c.bf16 %v876_v9, %v876_v9 }
 0x14a   : > { %1383 = vmatpush.bf16.msra.mxu1 %v1892_v30  ;;  %1929 = vmatpush.bf16.msra.mxu3 %v1892_v30  ;;  %v1040_v54 = vpack.c.b16 %v1017_v50, %v1016_v49  ;;  %v922_v63 = vpack.c.bf16 %v890_v59, %v890_v59  ;;  %v1003_v2 = vunpack.c.l.b16 %v907_v62  ;;  %v1019_v4 = vunpack.c.l.b16 %v923_v0  ;;  %v877_v10 = vld [vmem:[#allocation2 + $0x68] sm:$0xff]  ;;  %v892_v11 = vld [vmem:[#allocation2 + $0xe0] sm:$0xff]  ;;  %v1865_v23 = vld [vmem:[%s2442_s2 + $0x10] sm:$0xff] }
 0x14b   : > { %v909_v14 = vpack.c.bf16 %v877_v10, %v877_v10  ;;  %v924_v15 = vpack.c.bf16 %v892_v11, %v892_v11  ;;  %v925_v16 = vpack.c.bf16 %v893_v12, %v893_v12  ;;  %v1004_v17 = vunpack.c.l.b16 %v908_v13  ;;  %v1873_v24 = vld [vmem:[%s2442_s2 + $0x50] sm:$0xff]  ;;  %v879_v26 = vld [vmem:[#allocation2 + $0x48] sm:$0xff]  ;;  %v895_v28 = vld [vmem:[#allocation2 + $0xc0] sm:$0xff] }
 0x14c   : > { %v1018_v3 = vunpack.c.l.b16 %v922_v63  ;;  %v1033_v5 = vpack.c.b16 %v1003_v2, %v1002_v1  ;;  %v878_v25 = vld [vmem:[#allocation2 + $0x30] sm:$0xff]  ;;  %v911_v30 = vpack.c.bf16 %v879_v26, %v879_v26  ;;  %v1866_v39 = vld [vmem:[%s2442_s2 + $0x18] sm:$0xff]  ;;  %v880_v41 = vld [vmem:[#allocation2 + $0x80] sm:$0xff] }
 0x14d   : > { %1295 = vmatpush.bf16.msra.mxu0 %v1883_v31  ;;  %1922 = vmatpush.bf16.msra.mxu2 %v1883_v31  ;;  %v1005_v18 = vunpack.c.l.b16 %v909_v14  ;;  %v1020_v19 = vunpack.c.l.b16 %v924_v15  ;;  %v1021_v20 = vunpack.c.l.b16 %v925_v16  ;;  %v894_v27 = vld [vmem:[#allocation2 + $0x70] sm:$0xff]  ;;  %v910_v29 = vpack.c.bf16 %v878_v25, %v878_v25  ;;  %v881_v42 = vld [vmem:[#allocation2 + $0x88] sm:$0xff]  ;;  %v883_v58 = vld [vmem:[#allocation2 + $0xb8] sm:$0xff] }
 0x14e   : > { %1384 = vmatpush.bf16.msra.mxu1 %v1891_v32  ;;  %1930 = vmatpush.bf16.msra.mxu3 %v1891_v32  ;;  %v1041_v6 = vpack.c.b16 %v1019_v4, %v1018_v3  ;;  %v926_v31 = vpack.c.bf16 %v894_v27, %v894_v27  ;;  %v927_v32 = vpack.c.bf16 %v895_v28, %v895_v28  ;;  %v896_v43 = vld [vmem:[#allocation2 + $0xa8] sm:$0xff]  ;;  %v897_v44 = vld [vmem:[#allocation2 + $0xd0] sm:$0xff]  ;;  %v884_v9 = vld [vmem:[#allocation2 + $0x60] sm:$0xff] }
 0x14f   : > { %v1034_v21 = vpack.c.b16 %v1005_v18, %v1004_v17  ;;  %v1042_v22 = vpack.c.b16 %v1021_v20, %v1020_v19  ;;  %v928_v47 = vpack.c.bf16 %v896_v43, %v896_v43  ;;  %v929_v48 = vpack.c.bf16 %v897_v44, %v897_v44  ;;  %v882_v57 = vld [vmem:[#allocation2 + $0xe8] sm:$0xff]  ;;  %v898_v59 = vld [vmem:[#allocation2 + $0x10] sm:$0xff]  ;;  %v900_v11 = vld [vmem:[#allocation2 + $0xa0] sm:$0xff] }
 0x150   : > { %v1023_v36 = vunpack.c.l.b16 %v927_v32  ;;  %v899_v60 = vld [vmem:[#allocation2 + $0x28] sm:$0xff]  ;;  %v914_v61 = vpack.c.bf16 %v882_v57, %v882_v57  ;;  %v915_v62 = vpack.c.bf16 %v883_v58, %v883_v58  ;;  %v930_v63 = vpack.c.bf16 %v898_v59, %v898_v59  ;;  %v885_v10 = vld [vmem:[#allocation2 + $0xf0] sm:$0xff]  ;;  %v901_v12 = vld [vmem:[#allocation2 + $0xf8] sm:$0xff] }
 0x151   : > { %1296 = vmatpush.bf16.msra.mxu0 %v1882_v33  ;;  %1923 = vmatpush.bf16.msra.mxu2 %v1882_v33  ;;  %v1006_v33 = vunpack.c.l.b16 %v910_v29  ;;  %v931_v0 = vpack.c.bf16 %v899_v60, %v899_v60  ;;  %v916_v13 = vpack.c.bf16 %v884_v9, %v884_v9  ;;  %v917_v14 = vpack.c.bf16 %v885_v10, %v885_v10  ;;  %v886_v25 = vld [vmem:[#allocation2 + $0x8] sm:$0xff]  ;;  %v887_v26 = vld [vmem:[#allocation2 + $0x78] sm:$0xff]  ;;  %v902_v27 = vld [vmem:[#allocation2 + $0x20] sm:$0xff] }
 0x152   : > { %1385 = vmatpush.bf16.msra.mxu1 %v1890_v34  ;;  %1931 = vmatpush.bf16.msra.mxu3 %v1890_v34  ;;  %v1007_v34 = vunpack.c.l.b16 %v911_v30  ;;  %v1010_v1 = vunpack.c.l.b16 %v914_v61  ;;  %v1011_v2 = vunpack.c.l.b16 %v915_v62  ;;  %v1026_v3 = vunpack.c.l.b16 %v930_v63  ;;  %v903_v28 = vld [vmem:[#allocation2 + $0x98] sm:$0xff] }
 0x153   : > { %v1027_v4 = vunpack.c.l.b16 %v931_v0  ;;  %v932_v15 = vpack.c.bf16 %v900_v11, %v900_v11  ;;  %v933_v16 = vpack.c.bf16 %v901_v12, %v901_v12  ;;  %v1012_v17 = vunpack.c.l.b16 %v916_v13 }
 0x154   : > { %v1035_v37 = vpack.c.b16 %v1007_v34, %v1006_v33  ;;  %v1013_v18 = vunpack.c.l.b16 %v917_v14  ;;  %v918_v29 = vpack.c.bf16 %v886_v25, %v886_v25  ;;  %v919_v30 = vpack.c.bf16 %v887_v26, %v887_v26 }
 0x155   : > { %1297 = vmatpush.bf16.msra.mxu0 %v1881_v35  ;;  %1924 = vmatpush.bf16.msra.mxu2 %v1881_v35  ;;  %v1022_v35 = vunpack.c.l.b16 %v926_v31  ;;  %v1028_v19 = vunpack.c.l.b16 %v932_v15  ;;  %v1029_v20 = vunpack.c.l.b16 %v933_v16  ;;  %v934_v31 = vpack.c.bf16 %v902_v27, %v902_v27 }
 0x156   : > { %1386 = vmatpush.bf16.msra.mxu1 %v1889_v40  ;;  %1932 = vmatpush.bf16.msra.mxu3 %v1889_v40  ;;  %v1874_v40 = vld [vmem:[%s2442_s2 + $0x58] sm:$0xff]  ;;  %v935_v32 = vpack.c.bf16 %v903_v28, %v903_v28  ;;  %v1014_v33 = vunpack.c.l.b16 %v918_v29  ;;  %v1015_v34 = vunpack.c.l.b16 %v919_v30 }
 0x157   : > { %v1043_v38 = vpack.c.b16 %v1023_v36, %v1022_v35  ;;  %v1030_v35 = vunpack.c.l.b16 %v934_v31 }
 0x158   : > { %v1031_v36 = vunpack.c.l.b16 %v935_v32 }
 0x159   : > { %1298 = vmatpush.bf16.msra.mxu0 %v1880_v45  ;;  %1925 = vmatpush.bf16.msra.mxu2 %v1880_v45  ;;  %v912_v45 = vpack.c.bf16 %v880_v41, %v880_v41  ;;  %v2295_v41 = vld [vmem:[%s2444_s4] ss:$0 sm:$0xff] }
 0x15a   : > { %1387 = vmatpush.bf16.msra.mxu1 %v1888_v46  ;;  %1933 = vmatpush.bf16.msra.mxu3 %v1888_v46  ;;  %v913_v46 = vpack.c.bf16 %v881_v42, %v881_v42 }
 0x15b   : > { %v1008_v49 = vunpack.c.l.b16 %v912_v45 }
 0x15c   : > { %v1009_v50 = vunpack.c.l.b16 %v913_v46 }
 0x15d   : > { %1299 = vmatpush.bf16.msra.mxu0 %v1879_v51  ;;  %1926 = vmatpush.bf16.msra.mxu2 %v1879_v51  ;;  %v1024_v51 = vunpack.c.l.b16 %v928_v47 }
 0x15e   : > { %1388 = vmatpush.bf16.msra.mxu1 %v1887_v52  ;;  %1934 = vmatpush.bf16.msra.mxu3 %v1887_v52  ;;  %v1025_v52 = vunpack.c.l.b16 %v929_v48 }
 0x160   : > { %1300 = vmatmul.bf16.vlgmr.msra.gmra.mxu0 %v1032_v53  ;;  %1340 = vmatmul.bf16.vlgmr.msra.gmra.mxu2 %v1040_v54  ;;  %v1036_v53 = vpack.c.b16 %v1009_v50, %v1008_v49  ;;  %v1044_v54 = vpack.c.b16 %v1025_v52, %v1024_v51 }
 0x161   : > { %1389 = vmatmul.bf16.vlgmr.msra.gmra.mxu1 %v1863_v55  ;;  %1429 = vmatmul.bf16.vlgmr.msra.gmra.mxu3 %v1871_v56  ;;  %v1867_v55 = vld [vmem:[%s2442_s2 + $0x20] sm:$0xff] }
 0x162   : > { %v1875_v56 = vld [vmem:[%s2442_s2 + $0x60] sm:$0xff] }
 0x170   : > { %1305 = vmatmul.bf16.gmra.mxu0 %v1033_v5  ;;  %1345 = vmatmul.bf16.gmra.mxu2 %v1041_v6  ;;  %v1037_v5 = vpack.c.b16 %v1011_v2, %v1010_v1  ;;  %v1045_v6 = vpack.c.b16 %v1027_v4, %v1026_v3 }
 0x171   : > { %1394 = vmatmul.bf16.gmra.mxu1 %v1864_v7  ;;  %1434 = vmatmul.bf16.gmra.mxu3 %v1872_v8  ;;  %v1868_v7 = vld [vmem:[%s2442_s2 + $0x28] sm:$0xff] }
 0x172   : > { %v1876_v8 = vld [vmem:[%s2442_s2 + $0x68] sm:$0xff] }
 0x180   : > { %1310 = vmatmul.bf16.gmra.mxu0 %v1034_v21  ;;  %1350 = vmatmul.bf16.gmra.mxu2 %v1042_v22  ;;  %v1038_v21 = vpack.c.b16 %v1013_v18, %v1012_v17  ;;  %v1046_v22 = vpack.c.b16 %v1029_v20, %v1028_v19 }
 0x181   : > { %1399 = vmatmul.bf16.gmra.mxu1 %v1865_v23  ;;  %1439 = vmatmul.bf16.gmra.mxu3 %v1873_v24  ;;  %v1869_v23 = vld [vmem:[%s2442_s2 + $0x30] sm:$0xff] }
 0x182   : > { %v1877_v24 = vld [vmem:[%s2442_s2 + $0x70] sm:$0xff] }
 0x190   : > { %1315 = vmatmul.bf16.gmra.mxu0 %v1035_v37  ;;  %1355 = vmatmul.bf16.gmra.mxu2 %v1043_v38  ;;  %v1039_v37 = vpack.c.b16 %v1015_v34, %v1014_v33  ;;  %v1047_v38 = vpack.c.b16 %v1031_v36, %v1030_v35 }
 0x191   : > { %1404 = vmatmul.bf16.gmra.mxu1 %v1866_v39  ;;  %1444 = vmatmul.bf16.gmra.mxu3 %v1874_v40  ;;  %v1870_v39 = vld [vmem:[%s2442_s2 + $0x38] sm:$0xff] }
 0x192   : > { %v1878_v40 = vld [vmem:[%s2442_s2 + $0x78] sm:$0xff] }
 0x1a0   : > { %1320 = vmatmul.bf16.gmra.mxu0 %v1036_v53  ;;  %1360 = vmatmul.bf16.gmra.mxu2 %v1044_v54 }
 0x1a1   : > { %1409 = vmatmul.bf16.gmra.mxu1 %v1867_v55  ;;  %1449 = vmatmul.bf16.gmra.mxu3 %v1875_v56 }
 0x1b0   : > { %1325 = vmatmul.bf16.gmra.mxu0 %v1037_v5  ;;  %1365 = vmatmul.bf16.gmra.mxu2 %v1045_v6 }
 0x1b1   : > { %1414 = vmatmul.bf16.gmra.mxu1 %v1868_v7  ;;  %1454 = vmatmul.bf16.gmra.mxu3 %v1876_v8 }
 0x1c0   : > { %1330 = vmatmul.bf16.gmra.mxu0 %v1038_v21  ;;  %1370 = vmatmul.bf16.gmra.mxu2 %v1046_v22 }
 0x1c1   : > { %1419 = vmatmul.bf16.gmra.mxu1 %v1869_v23  ;;  %1459 = vmatmul.bf16.gmra.mxu3 %v1877_v24 }
 0x1d0   : > { %1335 = vmatmul.bf16.gmra.mxu0 %v1039_v37  ;;  %1375 = vmatmul.bf16.gmra.mxu2 %v1047_v38 }
 0x1d1   : > { %1424 = vmatmul.bf16.gmra.mxu1 %v1870_v39  ;;  %1464 = vmatmul.bf16.gmra.mxu3 %v1878_v40 }
 0x1dd   : > { %v1301_v42 = vpop.f32.mrf.mxu0 }
 0x1de   : > { %v1302_v43 = vadd.f32 %v2295_v41, %v1301_v42  ;;  %v1390_v44 = vpop.f32.mrf.mxu1 }
 0x1e0   : > { %v1391_v45 = vadd.f32 %v1390_v44, %v1302_v43 }
 0x1e2   : > { %1470 = vst [vmem:[%s2445_s5] sm:$0xff] %v1391_v45 }
 0x1e3   : > { %v1341_v46 = vpop.f32.mrf.mxu2 }
 0x1e4   : > { %v1342_v47 = vadd.f32 %v2295_v41, %v1341_v46  ;;  %v1430_v48 = vpop.f32.mrf.mxu3 }
 0x1e5   : > { %v1303_v49 = vpop.f32.mrf.mxu0 }
 0x1e6   : > { %v1431_v50 = vadd.f32 %v1430_v48, %v1342_v47  ;;  %v1304_v51 = vadd.f32 %v2295_v41, %v1303_v49  ;;  %v1392_v52 = vpop.f32.mrf.mxu1 }
 0x1e8   : > { %1486 = vst [vmem:[%s2445_s5 + $0x80] sm:$0xff] %v1431_v50  ;;  %v1393_v53 = vadd.f32 %v1392_v52, %v1304_v51 }
 0x1ea   : > { %1471 = vst [vmem:[%s2445_s5 + $0x8] sm:$0xff] %v1393_v53 }
 0x1eb   : > { %v1343_v54 = vpop.f32.mrf.mxu2 }
 0x1ec   : > { %v1344_v55 = vadd.f32 %v2295_v41, %v1343_v54  ;;  %v1432_v56 = vpop.f32.mrf.mxu3 }
 0x1ed   : > { %v1306_v57 = vpop.f32.mrf.mxu0 }
 0x1ee   : > { %v1433_v58 = vadd.f32 %v1432_v56, %v1344_v55  ;;  %v1307_v59 = vadd.f32 %v2295_v41, %v1306_v57  ;;  %v1395_v60 = vpop.f32.mrf.mxu1 }
 0x1f0   : > { %1487 = vst [vmem:[%s2445_s5 + $0x88] sm:$0xff] %v1433_v58  ;;  %v1396_v61 = vadd.f32 %v1395_v60, %v1307_v59 }
 0x1f2   : > { %1472 = vst [vmem:[%s2445_s5 + $0x10] sm:$0xff] %v1396_v61 }
 0x1f3   : > { %v1346_v62 = vpop.f32.mrf.mxu2 }
 0x1f4   : > { %v1347_v63 = vadd.f32 %v2295_v41, %v1346_v62  ;;  %v1435_v0 = vpop.f32.mrf.mxu3 }
 0x1f5   : > { %v1308_v1 = vpop.f32.mrf.mxu0 }
 0x1f6   : > { %v1436_v2 = vadd.f32 %v1435_v0, %v1347_v63  ;;  %v1309_v3 = vadd.f32 %v2295_v41, %v1308_v1  ;;  %v1397_v4 = vpop.f32.mrf.mxu1 }
 0x1f8   : > { %1488 = vst [vmem:[%s2445_s5 + $0x90] sm:$0xff] %v1436_v2  ;;  %v1398_v5 = vadd.f32 %v1397_v4, %v1309_v3 }
 0x1fa   : > { %1473 = vst [vmem:[%s2445_s5 + $0x18] sm:$0xff] %v1398_v5 }
 0x1fb   : > { %v1348_v6 = vpop.f32.mrf.mxu2 }
 0x1fc   : > { %v1349_v7 = vadd.f32 %v2295_v41, %v1348_v6  ;;  %v1437_v8 = vpop.f32.mrf.mxu3 }
 0x1fd   : > { %v1311_v9 = vpop.f32.mrf.mxu0 }
 0x1fe   : > { %v1438_v10 = vadd.f32 %v1437_v8, %v1349_v7  ;;  %v1312_v11 = vadd.f32 %v2295_v41, %v1311_v9  ;;  %v1400_v12 = vpop.f32.mrf.mxu1 }
 0x200   : > { %1489 = vst [vmem:[%s2445_s5 + $0x98] sm:$0xff] %v1438_v10  ;;  %v1401_v13 = vadd.f32 %v1400_v12, %v1312_v11 }
 0x202   : > { %1474 = vst [vmem:[%s2445_s5 + $0x20] sm:$0xff] %v1401_v13 }
 0x203   : > { %v1351_v14 = vpop.f32.mrf.mxu2 }
 0x204   : > { %v1352_v15 = vadd.f32 %v2295_v41, %v1351_v14  ;;  %v1440_v16 = vpop.f32.mrf.mxu3 }
 0x205   : > { %v1313_v17 = vpop.f32.mrf.mxu0 }
 0x206   : > { %v1441_v18 = vadd.f32 %v1440_v16, %v1352_v15  ;;  %v1314_v19 = vadd.f32 %v2295_v41, %v1313_v17  ;;  %v1402_v20 = vpop.f32.mrf.mxu1 }
 0x208   : > { %1490 = vst [vmem:[%s2445_s5 + $0xa0] sm:$0xff] %v1441_v18  ;;  %v1403_v21 = vadd.f32 %v1402_v20, %v1314_v19 }
 0x20a   : > { %1475 = vst [vmem:[%s2445_s5 + $0x28] sm:$0xff] %v1403_v21 }
 0x20b   : > { %v1353_v22 = vpop.f32.mrf.mxu2 }
 0x20c   : > { %v1354_v23 = vadd.f32 %v2295_v41, %v1353_v22  ;;  %v1442_v24 = vpop.f32.mrf.mxu3 }
 0x20d   : > { %v1316_v25 = vpop.f32.mrf.mxu0 }
 0x20e   : > { %v1443_v26 = vadd.f32 %v1442_v24, %v1354_v23  ;;  %v1317_v27 = vadd.f32 %v2295_v41, %v1316_v25  ;;  %v1405_v28 = vpop.f32.mrf.mxu1 }
 0x210   : > { %1491 = vst [vmem:[%s2445_s5 + $0xa8] sm:$0xff] %v1443_v26  ;;  %v1406_v29 = vadd.f32 %v1405_v28, %v1317_v27 }
 0x212   : > { %1476 = vst [vmem:[%s2445_s5 + $0x30] sm:$0xff] %v1406_v29 }
 0x213   : > { %v1356_v30 = vpop.f32.mrf.mxu2 }
 0x214   : > { %v1357_v31 = vadd.f32 %v2295_v41, %v1356_v30  ;;  %v1445_v32 = vpop.f32.mrf.mxu3 }
 0x215   : > { %v1318_v33 = vpop.f32.mrf.mxu0 }
 0x216   : > { %v1446_v34 = vadd.f32 %v1445_v32, %v1357_v31  ;;  %v1319_v35 = vadd.f32 %v2295_v41, %v1318_v33  ;;  %v1407_v36 = vpop.f32.mrf.mxu1 }
 0x218   : > { %1492 = vst [vmem:[%s2445_s5 + $0xb0] sm:$0xff] %v1446_v34  ;;  %v1408_v37 = vadd.f32 %v1407_v36, %v1319_v35 }
 0x21a   : > { %1477 = vst [vmem:[%s2445_s5 + $0x38] sm:$0xff] %v1408_v37 }
 0x21b   : > { %v1358_v38 = vpop.f32.mrf.mxu2 }
 0x21c   : > { %v1359_v39 = vadd.f32 %v2295_v41, %v1358_v38  ;;  %v1447_v40 = vpop.f32.mrf.mxu3 }
 0x21d   : > { %v1321_v42 = vpop.f32.mrf.mxu0 }
 0x21e   : > { %v1448_v43 = vadd.f32 %v1447_v40, %v1359_v39  ;;  %v1322_v44 = vadd.f32 %v2295_v41, %v1321_v42  ;;  %v1410_v45 = vpop.f32.mrf.mxu1 }
 0x220   : > { %1493 = vst [vmem:[%s2445_s5 + $0xb8] sm:$0xff] %v1448_v43  ;;  %v1411_v46 = vadd.f32 %v1410_v45, %v1322_v44 }
 0x222   : > { %1478 = vst [vmem:[%s2445_s5 + $0x40] sm:$0xff] %v1411_v46 }
 0x223   : > { %v1361_v47 = vpop.f32.mrf.mxu2 }
 0x224   : > { %v1362_v48 = vadd.f32 %v2295_v41, %v1361_v47  ;;  %v1450_v49 = vpop.f32.mrf.mxu3 }
 0x225   : > { %v1323_v50 = vpop.f32.mrf.mxu0 }
 0x226   : > { %v1451_v51 = vadd.f32 %v1450_v49, %v1362_v48  ;;  %v1324_v52 = vadd.f32 %v2295_v41, %v1323_v50  ;;  %v1412_v53 = vpop.f32.mrf.mxu1 }
 0x228   : > { %1494 = vst [vmem:[%s2445_s5 + $0xc0] sm:$0xff] %v1451_v51  ;;  %v1413_v54 = vadd.f32 %v1412_v53, %v1324_v52 }
 0x22a   : > { %1479 = vst [vmem:[%s2445_s5 + $0x48] sm:$0xff] %v1413_v54 }
 0x22b   : > { %v1363_v55 = vpop.f32.mrf.mxu2 }
 0x22c   : > { %v1364_v56 = vadd.f32 %v2295_v41, %v1363_v55  ;;  %v1452_v57 = vpop.f32.mrf.mxu3 }
 0x22d   : > { %v1326_v58 = vpop.f32.mrf.mxu0 }
 0x22e   : > { %v1453_v59 = vadd.f32 %v1452_v57, %v1364_v56  ;;  %v1327_v60 = vadd.f32 %v2295_v41, %v1326_v58  ;;  %v1415_v61 = vpop.f32.mrf.mxu1 }
 0x230   : > { %1495 = vst [vmem:[%s2445_s5 + $0xc8] sm:$0xff] %v1453_v59  ;;  %v1416_v62 = vadd.f32 %v1415_v61, %v1327_v60 }
 0x232   : > { %1480 = vst [vmem:[%s2445_s5 + $0x50] sm:$0xff] %v1416_v62 }
 0x233   : > { %v1366_v63 = vpop.f32.mrf.mxu2 }
 0x234   : > { %v1367_v0 = vadd.f32 %v2295_v41, %v1366_v63  ;;  %v1455_v1 = vpop.f32.mrf.mxu3 }
 0x235   : > { %v1328_v2 = vpop.f32.mrf.mxu0 }
 0x236   : > { %v1456_v3 = vadd.f32 %v1455_v1, %v1367_v0  ;;  %v1329_v4 = vadd.f32 %v2295_v41, %v1328_v2  ;;  %v1417_v5 = vpop.f32.mrf.mxu1 }
 0x238   : > { %1496 = vst [vmem:[%s2445_s5 + $0xd0] sm:$0xff] %v1456_v3  ;;  %v1418_v6 = vadd.f32 %v1417_v5, %v1329_v4 }
 0x23a   : > { %1481 = vst [vmem:[%s2445_s5 + $0x58] sm:$0xff] %v1418_v6 }
 0x23b   : > { %v1368_v7 = vpop.f32.mrf.mxu2 }
 0x23c   : > { %v1369_v8 = vadd.f32 %v2295_v41, %v1368_v7  ;;  %v1457_v9 = vpop.f32.mrf.mxu3 }
 0x23d   : > { %v1331_v10 = vpop.f32.mrf.mxu0 }
 0x23e   : > { %v1458_v11 = vadd.f32 %v1457_v9, %v1369_v8  ;;  %v1332_v12 = vadd.f32 %v2295_v41, %v1331_v10  ;;  %v1420_v13 = vpop.f32.mrf.mxu1 }
 0x240   : > { %1497 = vst [vmem:[%s2445_s5 + $0xd8] sm:$0xff] %v1458_v11  ;;  %v1421_v14 = vadd.f32 %v1420_v13, %v1332_v12 }
 0x242   : > { %1482 = vst [vmem:[%s2445_s5 + $0x60] sm:$0xff] %v1421_v14 }
 0x243   : > { %v1371_v15 = vpop.f32.mrf.mxu2 }
 0x244   : > { %v1372_v16 = vadd.f32 %v2295_v41, %v1371_v15  ;;  %v1460_v17 = vpop.f32.mrf.mxu3 }
 0x245   : > { %v1333_v18 = vpop.f32.mrf.mxu0 }
 0x246   : > { %v1461_v19 = vadd.f32 %v1460_v17, %v1372_v16  ;;  %v1334_v20 = vadd.f32 %v2295_v41, %v1333_v18  ;;  %v1422_v21 = vpop.f32.mrf.mxu1 }
 0x248   : > { %1498 = vst [vmem:[%s2445_s5 + $0xe0] sm:$0xff] %v1461_v19  ;;  %v1423_v22 = vadd.f32 %v1422_v21, %v1334_v20 }
 0x24a   : > { %1483 = vst [vmem:[%s2445_s5 + $0x68] sm:$0xff] %v1423_v22 }
 0x24b   : > { %v1373_v23 = vpop.f32.mrf.mxu2 }
 0x24c   : > { %v1374_v24 = vadd.f32 %v2295_v41, %v1373_v23  ;;  %v1462_v25 = vpop.f32.mrf.mxu3 }
 0x24d   : > { %v1336_v26 = vpop.f32.mrf.mxu0 }
 0x24e   : > { %v1463_v27 = vadd.f32 %v1462_v25, %v1374_v24  ;;  %v1337_v28 = vadd.f32 %v2295_v41, %v1336_v26  ;;  %v1425_v29 = vpop.f32.mrf.mxu1 }
 0x250   : > { %1499 = vst [vmem:[%s2445_s5 + $0xe8] sm:$0xff] %v1463_v27  ;;  %v1426_v30 = vadd.f32 %v1425_v29, %v1337_v28 }
 0x252   : > { %1484 = vst [vmem:[%s2445_s5 + $0x70] sm:$0xff] %v1426_v30 }
 0x253   : > { %v1376_v31 = vpop.f32.mrf.mxu2 }
 0x254   : > { %v1377_v32 = vadd.f32 %v2295_v41, %v1376_v31  ;;  %v1465_v33 = vpop.f32.mrf.mxu3 }
 0x255   : > { %v1338_v34 = vpop.f32.mrf.mxu0 }
 0x256   : > { %v1466_v35 = vadd.f32 %v1465_v33, %v1377_v32  ;;  %v1339_v36 = vadd.f32 %v2295_v41, %v1338_v34  ;;  %v1427_v37 = vpop.f32.mrf.mxu1 }
 0x258   : > { %1500 = vst [vmem:[%s2445_s5 + $0xf0] sm:$0xff] %v1466_v35  ;;  %v1428_v38 = vadd.f32 %v1427_v37, %v1339_v36 }
 0x25a   : > { %1485 = vst [vmem:[%s2445_s5 + $0x78] sm:$0xff] %v1428_v38 }
 0x25b   : > { %v1378_v39 = vpop.f32.mrf.mxu2 }
 0x25c   : > { %v1379_v40 = vadd.f32 %v2295_v41, %v1378_v39  ;;  %v1467_v42 = vpop.f32.mrf.mxu3 }
 0x25e   : > { %v1468_v43 = vadd.f32 %v1467_v42, %v1379_v40 }
 0x260   : > { %1501 = vst [vmem:[%s2445_s5 + $0xf8] sm:$0xff] %v1468_v43 }
 0x261 PF: > { %s15_s22 = sadd.s32 1, %s2015_s22   ;;  %s2446_s18 = smov %s2003_s19 }
 0x262   : > { %p12_p12 = scmp.ge.s32.totalorder %s15_s22, 4   ;;  %s2447_s19 = smov %s2083_s26 }
 0x263   : > { %s2448_s20 = smov %s2011_s21  ;;  %s2449_s21 = smov %s2451_s23 }
 0x264   :  { %14 = sbr.rel (!%p12_p12) target bundleno = 3 (0x3), region = 130 }

// kernel: graphsage_forward.2
= control target key start
LH: loop header
LB: loop body
LE: loop exit
PB: predicated region body
PF: predicated region fallthrough
CT: control target
= control target key end

     0   :  { %s2207_s18 = smov 0   ;;  %s2209_s19 = smov 0   ;;  %s2551_s0 = inlined_call_operand.vmem [shape: bf16[256,256], index: 0, kind: input, shape index: {}]   ;;  %s2552_s1 = inlined_call_operand.vmem [shape: bf16[256,128], index: 1, kind: input, shape index: {}, may-alias: {1,2}]   ;;  %s2553_s2 = inlined_call_operand.vmem [shape: bf16[256,128], index: 2, kind: input, shape index: {}, may-alias: {1,2}]   ;;  %s2554_s3 = inlined_call_operand.vmem [shape: bf16[256,128], index: 3, kind: input, shape index: {}]   ;;  %s2555_s4 = inlined_call_operand.vmem [shape: f32[1,128], index: 4, kind: input, shape index: {}]   ;;  %s2556_s5 = inlined_call_operand.vmem [shape: bf16[256,128], index: 5, kind: output, shape index: {}]  }
   0x1   :  { %s2211_s20 = smov 0   ;;  %s2213_s21 = smov 0  }
   0x2   :  { %s2215_s22 = smov 0  }
   0x3 LB: > { %s24_s23 = sadd.s32 1, %s2170_s21  ;;  %p43_p1 = scmp.ne.s32.totalorder %s2162_s19, %s2158_s18  ;;  %s2174_s22 = sphi %s2215_s22, %s15_s22   ;;  %s2170_s21 = sphi %s2213_s21, %s2560_s21   ;;  %s2166_s20 = sphi %s2211_s20, %s2559_s20   ;;  %s2162_s19 = sphi %s2209_s19, %s2558_s19   ;;  %s2158_s18 = sphi %s2207_s18, %s2557_s18  }
   0x4   : > { %p25_p0 = scmp.ge.s32.totalorder %s24_s23, 2  ;;  %p44_p2 = scmp.eq.s32.totalorder %s2174_s22, 0 }
   0x5   : > { %s36_s25 = sadd.s32 1, %s2162_s19  ;;  %p1666_p5 = scmp.ge.s32.totalorder %s2174_s22, 2 }
   0x6   : > { %s2562_s23 = smov (%p25_p0, %s24_s23), 0  ;;  %p45_p3 = por %p44_p2, %p43_p1 }
   0x7   : > { %s32_s24 = ssub.s32 %s2170_s21, %s2562_s23  ;;  %204 = sbr.rel (%p1666_p5) target bundleno = 48 (0x30), region = 28 }
   0x8   : > { %p34_p4 = scmp.eq.s32.totalorder %s32_s24, 0 }
   0xa   : > { %s2242_s26 = scalar_select %p34_p4, %s2162_s19, %s36_s25  }
   0xc   : > { %207 = sbr.rel (!%p45_p3) target bundleno = 48 (0x30), region = 32  ;;  %s209_s27 = sand.u32 (%p45_p3), 1, %s2162_s19  }
   0xd   : > { %s1668_s28 = sshll.u32 (%p45_p3), %s2170_s21, 2  ;;  %s1667_s29 = sshll.u32 (%p45_p3), %s209_s27, 7 }
   0xe   : > { %s2250_s7 = scalar_lea.vmem (%p45_p3), %s2551_s0, %s1668_s28  ;;  %s2254_s8 = scalar_lea.vmem (%p45_p3), [#allocation3], %s1667_s29 }
   0xf   : > { %v233_v0 = vld [vmem:[%s2250_s7] sm:$0xf] (%p45_p3)  ;;  %v235_v1 = vld [vmem:[%s2250_s7 + $0x8] sm:$0xf] (%p45_p3)  ;;  %v237_v2 = vld [vmem:[%s2250_s7 + $0x10] sm:$0xf] (%p45_p3) }
  0x10   : > { %234 = vst [vmem:[%s2254_s8] sm:$0xf] (%p45_p3), %v233_v0  ;;  %v239_v3 = vld [vmem:[%s2250_s7 + $0x18] sm:$0xf] (%p45_p3)  ;;  %v241_v4 = vld [vmem:[%s2250_s7 + $0x20] sm:$0xf] (%p45_p3) }
  0x11   : > { %236 = vst [vmem:[%s2254_s8 + $0x4] sm:$0xf] %v235_v1  ;;  %v243_v5 = vld [vmem:[%s2250_s7 + $0x28] sm:$0xf]  ;;  %v245_v6 = vld [vmem:[%s2250_s7 + $0x30] sm:$0xf] }
  0x12   : > { %238 = vst [vmem:[%s2254_s8 + $0x8] sm:$0xf] %v237_v2  ;;  %v247_v7 = vld [vmem:[%s2250_s7 + $0x38] sm:$0xf]  ;;  %v249_v8 = vld [vmem:[%s2250_s7 + $0x40] sm:$0xf] }
  0x13   : > { %240 = vst [vmem:[%s2254_s8 + $0xc] sm:$0xf] %v239_v3  ;;  %v251_v9 = vld [vmem:[%s2250_s7 + $0x48] sm:$0xf]  ;;  %v253_v10 = vld [vmem:[%s2250_s7 + $0x50] sm:$0xf] }
  0x14   : > { %242 = vst [vmem:[%s2254_s8 + $0x10] sm:$0xf] %v241_v4  ;;  %v255_v11 = vld [vmem:[%s2250_s7 + $0x58] sm:$0xf]  ;;  %v257_v12 = vld [vmem:[%s2250_s7 + $0x60] sm:$0xf] }
  0x15   : > { %244 = vst [vmem:[%s2254_s8 + $0x14] sm:$0xf] %v243_v5  ;;  %v259_v13 = vld [vmem:[%s2250_s7 + $0x68] sm:$0xf]  ;;  %v261_v14 = vld [vmem:[%s2250_s7 + $0x70] sm:$0xf] }
  0x16   : > { %246 = vst [vmem:[%s2254_s8 + $0x18] sm:$0xf] %v245_v6  ;;  %v263_v15 = vld [vmem:[%s2250_s7 + $0x78] sm:$0xf]  ;;  %v265_v16 = vld [vmem:[%s2250_s7 + $0x80] sm:$0xf] }
  0x17   : > { %248 = vst [vmem:[%s2254_s8 + $0x1c] sm:$0xf] %v247_v7  ;;  %v267_v17 = vld [vmem:[%s2250_s7 + $0x88] sm:$0xf]  ;;  %v269_v18 = vld [vmem:[%s2250_s7 + $0x90] sm:$0xf] }
  0x18   : > { %250 = vst [vmem:[%s2254_s8 + $0x20] sm:$0xf] %v249_v8  ;;  %v271_v19 = vld [vmem:[%s2250_s7 + $0x98] sm:$0xf]  ;;  %v273_v20 = vld [vmem:[%s2250_s7 + $0xa0] sm:$0xf] }
  0x19   : > { %252 = vst [vmem:[%s2254_s8 + $0x24] sm:$0xf] %v251_v9  ;;  %v275_v21 = vld [vmem:[%s2250_s7 + $0xa8] sm:$0xf]  ;;  %v277_v22 = vld [vmem:[%s2250_s7 + $0xb0] sm:$0xf] }
  0x1a   : > { %254 = vst [vmem:[%s2254_s8 + $0x28] sm:$0xf] %v253_v10  ;;  %v279_v23 = vld [vmem:[%s2250_s7 + $0xb8] sm:$0xf]  ;;  %v281_v24 = vld [vmem:[%s2250_s7 + $0xc0] sm:$0xf] }
  0x1b   : > { %256 = vst [vmem:[%s2254_s8 + $0x2c] sm:$0xf] %v255_v11  ;;  %v283_v25 = vld [vmem:[%s2250_s7 + $0xc8] sm:$0xf]  ;;  %v285_v26 = vld [vmem:[%s2250_s7 + $0xd0] sm:$0xf] }
  0x1c   : > { %258 = vst [vmem:[%s2254_s8 + $0x30] sm:$0xf] %v257_v12  ;;  %v287_v27 = vld [vmem:[%s2250_s7 + $0xd8] sm:$0xf]  ;;  %v289_v28 = vld [vmem:[%s2250_s7 + $0xe0] sm:$0xf] }
  0x1d   : > { %260 = vst [vmem:[%s2254_s8 + $0x34] sm:$0xf] %v259_v13  ;;  %v291_v29 = vld [vmem:[%s2250_s7 + $0xe8] sm:$0xf]  ;;  %v293_v30 = vld [vmem:[%s2250_s7 + $0xf0] sm:$0xf] }
  0x1e   : > { %262 = vst [vmem:[%s2254_s8 + $0x38] sm:$0xf] %v261_v14  ;;  %v295_v31 = vld [vmem:[%s2250_s7 + $0xf8] sm:$0xf] }
  0x1f   : > { %264 = vst [vmem:[%s2254_s8 + $0x3c] sm:$0xf] %v263_v15 }
  0x20   : > { %266 = vst [vmem:[%s2254_s8 + $0x40] sm:$0xf] %v265_v16 }
  0x21   : > { %268 = vst [vmem:[%s2254_s8 + $0x44] sm:$0xf] %v267_v17 }
  0x22   : > { %270 = vst [vmem:[%s2254_s8 + $0x48] sm:$0xf] %v269_v18 }
  0x23   : > { %272 = vst [vmem:[%s2254_s8 + $0x4c] sm:$0xf] %v271_v19 }
  0x24   : > { %274 = vst [vmem:[%s2254_s8 + $0x50] sm:$0xf] %v273_v20 }
  0x25   : > { %276 = vst [vmem:[%s2254_s8 + $0x54] sm:$0xf] %v275_v21 }
  0x26   : > { %278 = vst [vmem:[%s2254_s8 + $0x58] sm:$0xf] %v277_v22 }
  0x27   : > { %280 = vst [vmem:[%s2254_s8 + $0x5c] sm:$0xf] %v279_v23 }
  0x28   : > { %282 = vst [vmem:[%s2254_s8 + $0x60] sm:$0xf] %v281_v24 }
  0x29   : > { %284 = vst [vmem:[%s2254_s8 + $0x64] sm:$0xf] %v283_v25 }
  0x2a   : > { %286 = vst [vmem:[%s2254_s8 + $0x68] sm:$0xf] %v285_v26 }
  0x2b   : > { %288 = vst [vmem:[%s2254_s8 + $0x6c] sm:$0xf] %v287_v27 }
  0x2c   : > { %290 = vst [vmem:[%s2254_s8 + $0x70] sm:$0xf] %v289_v28 }
  0x2d   : > { %292 = vst [vmem:[%s2254_s8 + $0x74] sm:$0xf] %v291_v29 }
  0x2e   : > { %294 = vst [vmem:[%s2254_s8 + $0x78] sm:$0xf] %v293_v30 }
  0x2f   : > { %296 = vst [vmem:[%s2254_s8 + $0x7c] sm:$0xf] %v295_v31 }
  0x30 PF: > { %p1669_p6 = scmp.ge.s32.totalorder %s2174_s22, 1  ;;  %p392_p7 = scmp.lt.s32.totalorder %s2174_s22, 3 }
  0x32   : > { %p393_p8 = pnand %p1669_p6, %p392_p7 }
  0x33   : > { %s399_s9 = sand.u32 (!%p393_p8), 1, %s2158_s18   ;;  %s1671_s10 = sshll.u32 (!%p393_p8), %s2166_s20, 4 }
  0x34   : > { %396 = sbr.rel (%p393_p8) target bundleno = 613 (0x265), region = 77  ;;  %s1670_s11 = sshll.u32 (!%p393_p8), %s399_s9, 7 }
  0x35   : > { %p438_p9 = scmp.lt.s32.totalorder (!%p393_p8), %s1671_s10, 31  ;;  %s2327_s16 = scalar_lea.vmem (!%p393_p8), [#allocation3], %s1670_s11 }
  0x36   : > { %p1673_p10 = scmp.ne.s32.totalorder (!%p393_p8), %s2166_s20, 0 }
  0x39   : > { %s2564_s10 = smov (!%p438_p9, %s1671_s10), 31  ;;  %458 = sbr.rel (%p1673_p10) target bundleno = 95 (0x5f), region = 85 }
  0x3a   : > { %s1672_s12 = sshll.u32 %s2564_s10, 2 }
  0x3b   : > { %s2325_s15 = scalar_lea.vmem %s2552_s1, %s1672_s12 }
  0x3e   : > { %v2176_v32 = vmov 0.0  }
  0x3f   : > { %459 = vst [vmem:[#allocation2 + $0xb0] sm:$0xff] %v2176_v32 }
  0x40   : > { %460 = vst [vmem:[#allocation2] sm:$0xff] %v2176_v32 }
  0x41   : > { %461 = vst [vmem:[#allocation2 + $0xd8] sm:$0xff] %v2176_v32 }
  0x42   : > { %462 = vst [vmem:[#allocation2 + $0x18] sm:$0xff] %v2176_v32 }
  0x43   : > { %463 = vst [vmem:[#allocation2 + $0x50] sm:$0xff] %v2176_v32 }
  0x44   : > { %464 = vst [vmem:[#allocation2 + $0x68] sm:$0xff] %v2176_v32 }
  0x45   : > { %465 = vst [vmem:[#allocation2 + $0x30] sm:$0xff] %v2176_v32 }
  0x46   : > { %466 = vst [vmem:[#allocation2 + $0x48] sm:$0xff] %v2176_v32 }
  0x47   : > { %467 = vst [vmem:[#allocation2 + $0x80] sm:$0xff] %v2176_v32 }
  0x48   : > { %468 = vst [vmem:[#allocation2 + $0x88] sm:$0xff] %v2176_v32 }
  0x49   : > { %469 = vst [vmem:[#allocation2 + $0xe8] sm:$0xff] %v2176_v32 }
  0x4a   : > { %470 = vst [vmem:[#allocation2 + $0xb8] sm:$0xff] %v2176_v32 }
  0x4b   : > { %471 = vst [vmem:[#allocation2 + $0x60] sm:$0xff] %v2176_v32 }
  0x4c   : > { %472 = vst [vmem:[#allocation2 + $0xf0] sm:$0xff] %v2176_v32 }
  0x4d   : > { %473 = vst [vmem:[#allocation2 + $0x8] sm:$0xff] %v2176_v32 }
  0x4e   : > { %474 = vst [vmem:[#allocation2 + $0x78] sm:$0xff] %v2176_v32 }
  0x4f   : > { %475 = vst [vmem:[#allocation2 + $0x38] sm:$0xff] %v2176_v32 }
  0x50   : > { %476 = vst [vmem:[#allocation2 + $0x58] sm:$0xff] %v2176_v32 }
  0x51   : > { %477 = vst [vmem:[#allocation2 + $0x40] sm:$0xff] %v2176_v32 }
  0x52   : > { %478 = vst [vmem:[#allocation2 + $0xc8] sm:$0xff] %v2176_v32 }
  0x53   : > { %479 = vst [vmem:[#allocation2 + $0xe0] sm:$0xff] %v2176_v32 }
  0x54   : > { %480 = vst [vmem:[#allocation2 + $0x90] sm:$0xff] %v2176_v32 }
  0x55   : > { %481 = vst [vmem:[#allocation2 + $0x70] sm:$0xff] %v2176_v32 }
  0x56   : > { %482 = vst [vmem:[#allocation2 + $0xc0] sm:$0xff] %v2176_v32 }
  0x57   : > { %483 = vst [vmem:[#allocation2 + $0xa8] sm:$0xff] %v2176_v32 }
  0x58   : > { %484 = vst [vmem:[#allocation2 + $0xd0] sm:$0xff] %v2176_v32 }
  0x59   : > { %485 = vst [vmem:[#allocation2 + $0x10] sm:$0xff] %v2176_v32 }
  0x5a   : > { %486 = vst [vmem:[#allocation2 + $0x28] sm:$0xff] %v2176_v32 }
  0x5b   : > { %487 = vst [vmem:[#allocation2 + $0xa0] sm:$0xff] %v2176_v32 }
  0x5c   : > { %488 = vst [vmem:[#allocation2 + $0xf8] sm:$0xff] %v2176_v32 }
  0x5d   : > { %489 = vst [vmem:[#allocation2 + $0x20] sm:$0xff] %v2176_v32 }
  0x5e   : > { %490 = vst [vmem:[#allocation2 + $0x98] sm:$0xff] %v2176_v32 }
  0x5f PF: > { %v1926_v33 = vld [vmem:[%s2325_s15 + $0x38] sm:$0xff]  ;;  %v1925_v34 = vld [vmem:[%s2325_s15 + $0x30] sm:$0xff]  ;;  %v1924_v35 = vld [vmem:[%s2325_s15 + $0x28] sm:$0xff]  ;;  %p1770_p11 = scmp.ne.s32.totalorder %s2166_s20, 1 }
  0x60   : > { %715 = vmatpush.bf16.msra.mxu0 %v1926_v33  ;;  %2054 = vmatpush.bf16.msra.mxu1 %v1926_v33  ;;  %v1923_v36 = vld [vmem:[%s2325_s15 + $0x20] sm:$0xff]  ;;  %v1922_v37 = vld [vmem:[%s2325_s15 + $0x18] sm:$0xff]  ;;  %v1921_v38 = vld [vmem:[%s2325_s15 + $0x10] sm:$0xff] }
  0x61   : > { %2055 = vmatpush.bf16.msra.mxu2 %v1926_v33  ;;  %2056 = vmatpush.bf16.msra.mxu3 %v1926_v33  ;;  %v1920_v39 = vld [vmem:[%s2325_s15 + $0x8] sm:$0xff]  ;;  %v1919_v40 = vld [vmem:[%s2325_s15] sm:$0xff]  ;;  %v1905_v49 = vld [vmem:[%s2327_s16 + $0x10] sm:$0xff] }
  0x62   : > { %v1903_v41 = vld [vmem:[%s2327_s16] sm:$0xff]  ;;  %v1904_v45 = vld [vmem:[%s2327_s16 + $0x8] sm:$0xff]  ;;  %v1909_v50 = vld [vmem:[%s2327_s16 + $0x30] sm:$0xff] }
  0x63   : > { %v1907_v42 = vld [vmem:[%s2327_s16 + $0x20] sm:$0xff]  ;;  %v1908_v46 = vld [vmem:[%s2327_s16 + $0x28] sm:$0xff]  ;;  %v1913_v51 = vld [vmem:[%s2327_s16 + $0x50] sm:$0xff] }
  0x64   : > { %716 = vmatpush.bf16.msra.mxu0 %v1925_v34  ;;  %2057 = vmatpush.bf16.msra.mxu1 %v1925_v34  ;;  %v1911_v43 = vld [vmem:[%s2327_s16 + $0x40] sm:$0xff]  ;;  %v1912_v47 = vld [vmem:[%s2327_s16 + $0x48] sm:$0xff]  ;;  %v1917_v52 = vld [vmem:[%s2327_s16 + $0x70] sm:$0xff] }
  0x65   : > { %2058 = vmatpush.bf16.msra.mxu2 %v1925_v34  ;;  %2059 = vmatpush.bf16.msra.mxu3 %v1925_v34  ;;  %v1915_v44 = vld [vmem:[%s2327_s16 + $0x60] sm:$0xff]  ;;  %v1916_v48 = vld [vmem:[%s2327_s16 + $0x68] sm:$0xff]  ;;  %v1906_v53 = vld [vmem:[%s2327_s16 + $0x18] sm:$0xff] }
  0x66   : > { %v1910_v54 = vld [vmem:[%s2327_s16 + $0x38] sm:$0xff]  ;;  %v491_v57 = vld [vmem:[#allocation2 + $0xb0] sm:$0xff]  ;;  %v499_v58 = vld [vmem:[#allocation2 + $0x80] sm:$0xff] }
  0x67   : > { %v1914_v55 = vld [vmem:[%s2327_s16 + $0x58] sm:$0xff]  ;;  %v515_v0 = vld [vmem:[#allocation2 + $0xa8] sm:$0xff]  ;;  %v492_v1 = vld [vmem:[#allocation2] sm:$0xff] }
  0x68   : > { %717 = vmatpush.bf16.msra.mxu0 %v1924_v35  ;;  %2060 = vmatpush.bf16.msra.mxu1 %v1924_v35  ;;  %v1918_v56 = vld [vmem:[%s2327_s16 + $0x78] sm:$0xff]  ;;  %v500_v2 = vld [vmem:[#allocation2 + $0x88] sm:$0xff]  ;;  %v516_v12 = vld [vmem:[#allocation2 + $0xd0] sm:$0xff] }
  0x69   : > { %2061 = vmatpush.bf16.msra.mxu2 %v1924_v35  ;;  %2062 = vmatpush.bf16.msra.mxu3 %v1924_v35  ;;  %v507_v63 = vld [vmem:[#allocation2 + $0x38] sm:$0xff]  ;;  %v501_v14 = vld [vmem:[#allocation2 + $0xe8] sm:$0xff]  ;;  %v509_v23 = vld [vmem:[#allocation2 + $0x40] sm:$0xff] }
  0x6a   : > { %v508_v11 = vld [vmem:[#allocation2 + $0x58] sm:$0xff]  ;;  %v517_v24 = vld [vmem:[#allocation2 + $0x10] sm:$0xff]  ;;  %v510_v35 = vld [vmem:[#allocation2 + $0xc8] sm:$0xff] }
  0x6b   : > { %v493_v13 = vld [vmem:[#allocation2 + $0xd8] sm:$0xff] }
  0x6c   : > { %718 = vmatpush.bf16.msra.mxu0 %v1923_v36  ;;  %2063 = vmatpush.bf16.msra.mxu1 %v1923_v36  ;;  %v494_v25 = vld [vmem:[#allocation2 + $0x18] sm:$0xff] }
  0x6d   : > { %2064 = vmatpush.bf16.msra.mxu2 %v1923_v36  ;;  %2065 = vmatpush.bf16.msra.mxu3 %v1923_v36  ;;  %v502_v26 = vld [vmem:[#allocation2 + $0xb8] sm:$0xff]  ;;  %v518_v36 = vld [vmem:[#allocation2 + $0x28] sm:$0xff] }
  0x70   : > { %719 = vmatpush.bf16.msra.mxu0 %v1922_v37  ;;  %2066 = vmatpush.bf16.msra.mxu1 %v1922_v37 }
  0x71   : > { %2067 = vmatpush.bf16.msra.mxu2 %v1922_v37  ;;  %2068 = vmatpush.bf16.msra.mxu3 %v1922_v37  ;;  %v495_v37 = vld [vmem:[#allocation2 + $0x50] sm:$0xff] }
  0x74   : > { %720 = vmatpush.bf16.msra.mxu0 %v1921_v38  ;;  %2069 = vmatpush.bf16.msra.mxu1 %v1921_v38 }
  0x75   : > { %2070 = vmatpush.bf16.msra.mxu2 %v1921_v38  ;;  %2071 = vmatpush.bf16.msra.mxu3 %v1921_v38  ;;  %v503_v38 = vld [vmem:[#allocation2 + $0x60] sm:$0xff] }
  0x78   : > { %721 = vmatpush.bf16.msra.mxu0 %v1920_v39  ;;  %2072 = vmatpush.bf16.msra.mxu1 %v1920_v39 }
  0x79   : > { %2073 = vmatpush.bf16.msra.mxu2 %v1920_v39  ;;  %2074 = vmatpush.bf16.msra.mxu3 %v1920_v39 }
  0x7c   : > { %722 = vmatpush.bf16.msra.mxu0 %v1919_v40  ;;  %2075 = vmatpush.bf16.msra.mxu1 %v1919_v40 }
  0x7d   : > { %2076 = vmatpush.bf16.msra.mxu2 %v1919_v40  ;;  %2077 = vmatpush.bf16.msra.mxu3 %v1919_v40 }
  0x7f   : > { %723 = vmatmul.bf16.vlgmr.msra.gmra.mxu0 %v1903_v41  ;;  %743 = vmatmul.bf16.vlgmr.msra.gmra.mxu1 %v1907_v42 }
  0x80   : > { %763 = vmatmul.bf16.vlgmr.msra.gmra.mxu2 %v1911_v43  ;;  %783 = vmatmul.bf16.vlgmr.msra.gmra.mxu3 %v1915_v44 }
  0x8f   : > { %728 = vmatmul.bf16.gmra.mxu0 %v1904_v45  ;;  %748 = vmatmul.bf16.gmra.mxu1 %v1908_v46 }
  0x90   : > { %768 = vmatmul.bf16.gmra.mxu2 %v1912_v47  ;;  %788 = vmatmul.bf16.gmra.mxu3 %v1916_v48  ;;  %v511_v47 = vld [vmem:[#allocation2 + $0xe0] sm:$0xff] }
  0x91   : > { %v519_v48 = vld [vmem:[#allocation2 + $0xa0] sm:$0xff] }
  0x9f   : > { %733 = vmatmul.bf16.gmra.mxu0 %v1905_v49  ;;  %753 = vmatmul.bf16.gmra.mxu1 %v1909_v50  ;;  %v496_v49 = vld [vmem:[#allocation2 + $0x68] sm:$0xff]  ;;  %v504_v50 = vld [vmem:[#allocation2 + $0xf0] sm:$0xff] }
  0xa0   : > { %773 = vmatmul.bf16.gmra.mxu2 %v1913_v51  ;;  %793 = vmatmul.bf16.gmra.mxu3 %v1917_v52 }
  0xaf   : > { %738 = vmatmul.bf16.gmra.mxu0 %v1906_v53  ;;  %758 = vmatmul.bf16.gmra.mxu1 %v1910_v54 }
  0xb0   : > { %778 = vmatmul.bf16.gmra.mxu2 %v1914_v55  ;;  %798 = vmatmul.bf16.gmra.mxu3 %v1918_v56 }
  0xfc   : > { %v724_v59 = vpop.f32.mrf.mxu0  ;;  %v744_v60 = vpop.f32.mrf.mxu1 }
  0xfd   : > { %v804_v61 = vadd.f32 %v724_v59, %v491_v57  ;;  %v812_v62 = vadd.f32 %v744_v60, %v499_v58  ;;  %v512_v59 = vld [vmem:[#allocation2 + $0x90] sm:$0xff]  ;;  %v520_v60 = vld [vmem:[#allocation2 + $0xf8] sm:$0xff] }
  0xff   : > { %836 = vst [vmem:[#allocation2 + $0xb0] sm:$0xff] %v804_v61  ;;  %v497_v61 = vld [vmem:[#allocation2 + $0x30] sm:$0xff] }
 0x100   : > { %844 = vst [vmem:[#allocation2 + $0x80] sm:$0xff] %v812_v62  ;;  %v505_v62 = vld [vmem:[#allocation2 + $0x8] sm:$0xff] }
 0x103   : > { %v764_v3 = vpop.f32.mrf.mxu2  ;;  %v784_v4 = vpop.f32.mrf.mxu3 }
 0x104   : > { %v820_v5 = vadd.f32 %v764_v3, %v507_v63  ;;  %v828_v6 = vadd.f32 %v784_v4, %v515_v0  ;;  %v726_v7 = vpop.f32.mrf.mxu0  ;;  %v746_v8 = vpop.f32.mrf.mxu1 }
 0x105   : > { %v805_v9 = vadd.f32 %v726_v7, %v492_v1  ;;  %v813_v10 = vadd.f32 %v746_v8, %v500_v2  ;;  %v513_v7 = vld [vmem:[#allocation2 + $0x70] sm:$0xff]  ;;  %v521_v8 = vld [vmem:[#allocation2 + $0x20] sm:$0xff] }
 0x106   : > { %852 = vst [vmem:[#allocation2 + $0x38] sm:$0xff] %v820_v5 }
 0x107   : > { %860 = vst [vmem:[#allocation2 + $0xa8] sm:$0xff] %v828_v6 }
 0x108   : > { %837 = vst [vmem:[#allocation2] sm:$0xff] %v805_v9  ;;  %v498_v9 = vld [vmem:[#allocation2 + $0x48] sm:$0xff] }
 0x109   : > { %845 = vst [vmem:[#allocation2 + $0x88] sm:$0xff] %v813_v10  ;;  %v506_v10 = vld [vmem:[#allocation2 + $0x78] sm:$0xff] }
 0x10b   : > { %v766_v15 = vpop.f32.mrf.mxu2  ;;  %v786_v16 = vpop.f32.mrf.mxu3 }
 0x10c   : > { %v821_v17 = vadd.f32 %v766_v15, %v508_v11  ;;  %v829_v18 = vadd.f32 %v786_v16, %v516_v12  ;;  %v729_v19 = vpop.f32.mrf.mxu0  ;;  %v749_v20 = vpop.f32.mrf.mxu1 }
 0x10d   : > { %v806_v21 = vadd.f32 %v729_v19, %v493_v13  ;;  %v814_v22 = vadd.f32 %v749_v20, %v501_v14  ;;  %v514_v19 = vld [vmem:[#allocation2 + $0xc0] sm:$0xff]  ;;  %v522_v20 = vld [vmem:[#allocation2 + $0x98] sm:$0xff] }
 0x10e   : > { %853 = vst [vmem:[#allocation2 + $0x58] sm:$0xff] %v821_v17 }
 0x10f   : > { %861 = vst [vmem:[#allocation2 + $0xd0] sm:$0xff] %v829_v18 }
 0x110   : > { %838 = vst [vmem:[#allocation2 + $0xd8] sm:$0xff] %v806_v21 }
 0x111   : > { %846 = vst [vmem:[#allocation2 + $0xe8] sm:$0xff] %v814_v22 }
 0x113   : > { %v769_v27 = vpop.f32.mrf.mxu2  ;;  %v789_v28 = vpop.f32.mrf.mxu3 }
 0x114   : > { %v822_v29 = vadd.f32 %v769_v27, %v509_v23  ;;  %v830_v30 = vadd.f32 %v789_v28, %v517_v24  ;;  %v731_v31 = vpop.f32.mrf.mxu0  ;;  %v751_v32 = vpop.f32.mrf.mxu1 }
 0x115   : > { %v807_v33 = vadd.f32 %v731_v31, %v494_v25  ;;  %v815_v34 = vadd.f32 %v751_v32, %v502_v26 }
 0x116   : > { %854 = vst [vmem:[#allocation2 + $0x40] sm:$0xff] %v822_v29 }
 0x117   : > { %862 = vst [vmem:[#allocation2 + $0x10] sm:$0xff] %v830_v30 }
 0x118   : > { %839 = vst [vmem:[#allocation2 + $0x18] sm:$0xff] %v807_v33 }
 0x119   : > { %847 = vst [vmem:[#allocation2 + $0xb8] sm:$0xff] %v815_v34 }
 0x11b   : > { %v771_v39 = vpop.f32.mrf.mxu2  ;;  %v791_v40 = vpop.f32.mrf.mxu3 }
 0x11c   : > { %v823_v41 = vadd.f32 %v771_v39, %v510_v35  ;;  %v831_v42 = vadd.f32 %v791_v40, %v518_v36  ;;  %v734_v43 = vpop.f32.mrf.mxu0  ;;  %v754_v44 = vpop.f32.mrf.mxu1 }
 0x11d   : > { %v808_v45 = vadd.f32 %v734_v43, %v495_v37  ;;  %v816_v46 = vadd.f32 %v754_v44, %v503_v38 }
 0x11e   : > { %855 = vst [vmem:[#allocation2 + $0xc8] sm:$0xff] %v823_v41 }
 0x11f   : > { %863 = vst [vmem:[#allocation2 + $0x28] sm:$0xff] %v831_v42 }
 0x120   : > { %840 = vst [vmem:[#allocation2 + $0x50] sm:$0xff] %v808_v45 }
 0x121   : > { %848 = vst [vmem:[#allocation2 + $0x60] sm:$0xff] %v816_v46 }
 0x123   : > { %v774_v51 = vpop.f32.mrf.mxu2  ;;  %v794_v52 = vpop.f32.mrf.mxu3 }
 0x124   : > { %v824_v53 = vadd.f32 %v774_v51, %v511_v47  ;;  %v832_v54 = vadd.f32 %v794_v52, %v519_v48  ;;  %v736_v55 = vpop.f32.mrf.mxu0  ;;  %v756_v56 = vpop.f32.mrf.mxu1 }
 0x125   : > { %v809_v57 = vadd.f32 %v736_v55, %v496_v49  ;;  %v817_v58 = vadd.f32 %v756_v56, %v504_v50 }
 0x126   : > { %856 = vst [vmem:[#allocation2 + $0xe0] sm:$0xff] %v824_v53 }
 0x127   : > { %864 = vst [vmem:[#allocation2 + $0xa0] sm:$0xff] %v832_v54 }
 0x128   : > { %841 = vst [vmem:[#allocation2 + $0x68] sm:$0xff] %v809_v57 }
 0x129   : > { %849 = vst [vmem:[#allocation2 + $0xf0] sm:$0xff] %v817_v58 }
 0x12b   : > { %v776_v63 = vpop.f32.mrf.mxu2  ;;  %v796_v0 = vpop.f32.mrf.mxu3 }
 0x12c   : > { %v825_v1 = vadd.f32 %v776_v63, %v512_v59  ;;  %v833_v2 = vadd.f32 %v796_v0, %v520_v60  ;;  %v739_v3 = vpop.f32.mrf.mxu0  ;;  %v759_v4 = vpop.f32.mrf.mxu1 }
 0x12d   : > { %v810_v5 = vadd.f32 %v739_v3, %v497_v61  ;;  %v818_v6 = vadd.f32 %v759_v4, %v505_v62 }
 0x12e   : > { %857 = vst [vmem:[#allocation2 + $0x90] sm:$0xff] %v825_v1 }
 0x12f   : > { %865 = vst [vmem:[#allocation2 + $0xf8] sm:$0xff] %v833_v2 }
 0x130   : > { %842 = vst [vmem:[#allocation2 + $0x30] sm:$0xff] %v810_v5 }
 0x131   : > { %850 = vst [vmem:[#allocation2 + $0x8] sm:$0xff] %v818_v6 }
 0x133   : > { %v779_v11 = vpop.f32.mrf.mxu2  ;;  %v799_v12 = vpop.f32.mrf.mxu3 }
 0x134   : > { %v826_v13 = vadd.f32 %v779_v11, %v513_v7  ;;  %v834_v14 = vadd.f32 %v799_v12, %v521_v8  ;;  %v741_v15 = vpop.f32.mrf.mxu0  ;;  %v761_v16 = vpop.f32.mrf.mxu1 }
 0x135   : > { %v811_v17 = vadd.f32 %v741_v15, %v498_v9  ;;  %v819_v18 = vadd.f32 %v761_v16, %v506_v10 }
 0x136   : > { %858 = vst [vmem:[#allocation2 + $0x70] sm:$0xff] %v826_v13 }
 0x137   : > { %866 = vst [vmem:[#allocation2 + $0x20] sm:$0xff] %v834_v14 }
 0x138   : > { %843 = vst [vmem:[#allocation2 + $0x48] sm:$0xff] %v811_v17 }
 0x139   : > { %851 = vst [vmem:[#allocation2 + $0x78] sm:$0xff] %v819_v18 }
 0x13b   : > { %v781_v21 = vpop.f32.mrf.mxu2  ;;  %v801_v22 = vpop.f32.mrf.mxu3  ;;  %871 = sbr.rel (%p1770_p11) target bundleno = 613 (0x265), region = 89 }
 0x13c   : > { %v827_v23 = vadd.f32 %v781_v21, %v514_v19  ;;  %v835_v24 = vadd.f32 %v801_v22, %v522_v20 }
 0x13e   : > { %859 = vst [vmem:[#allocation2 + $0xc0] sm:$0xff] %v827_v23 }
 0x13f   : > { %867 = vst [vmem:[#allocation2 + $0x98] sm:$0xff] %v835_v24 }
 0x140   : > { %v1950_v25 = vld [vmem:[%s2554_s3 + $0x38] sm:$0xff]  ;;  %v1949_v27 = vld [vmem:[%s2554_s3 + $0x30] sm:$0xff]  ;;  %v1948_v29 = vld [vmem:[%s2554_s3 + $0x28] sm:$0xff] }
 0x141   : > { %v1958_v26 = vld [vmem:[%s2554_s3 + $0x78] sm:$0xff]  ;;  %1292 = vmatpush.bf16.msra.mxu0 %v1950_v25  ;;  %2078 = vmatpush.bf16.msra.mxu2 %v1950_v25  ;;  %v1957_v28 = vld [vmem:[%s2554_s3 + $0x70] sm:$0xff]  ;;  %v1956_v30 = vld [vmem:[%s2554_s3 + $0x68] sm:$0xff] }
 0x142   : > { %1381 = vmatpush.bf16.msra.mxu1 %v1958_v26  ;;  %2086 = vmatpush.bf16.msra.mxu3 %v1958_v26  ;;  %v1947_v31 = vld [vmem:[%s2554_s3 + $0x20] sm:$0xff]  ;;  %v1946_v33 = vld [vmem:[%s2554_s3 + $0x18] sm:$0xff]  ;;  %v1945_v35 = vld [vmem:[%s2554_s3 + $0x10] sm:$0xff] }
 0x143   : > { %v1955_v32 = vld [vmem:[%s2554_s3 + $0x60] sm:$0xff]  ;;  %v1954_v34 = vld [vmem:[%s2554_s3 + $0x58] sm:$0xff]  ;;  %v872_v36 = vld [vmem:[#allocation2 + $0xb0] sm:$0xff] }
 0x144   : > { %v873_v37 = vld [vmem:[#allocation2] sm:$0xff]  ;;  %v888_v38 = vld [vmem:[#allocation2 + $0x38] sm:$0xff]  ;;  %v1953_v40 = vld [vmem:[%s2554_s3 + $0x50] sm:$0xff]  ;;  %v904_v41 = vpack.c.bf16 %v872_v36, %v872_v36 }
 0x145   : > { %1293 = vmatpush.bf16.msra.mxu0 %v1949_v27  ;;  %2079 = vmatpush.bf16.msra.mxu2 %v1949_v27  ;;  %v889_v39 = vld [vmem:[#allocation2 + $0x58] sm:$0xff]  ;;  %v905_v42 = vpack.c.bf16 %v873_v37, %v873_v37  ;;  %v920_v43 = vpack.c.bf16 %v888_v38, %v888_v38  ;;  %v1944_v45 = vld [vmem:[%s2554_s3 + $0x8] sm:$0xff]  ;;  %v1943_v51 = vld [vmem:[%s2554_s3] sm:$0xff] }
 0x146   : > { %1382 = vmatpush.bf16.msra.mxu1 %v1957_v28  ;;  %2087 = vmatpush.bf16.msra.mxu3 %v1957_v28  ;;  %v921_v44 = vpack.c.bf16 %v889_v39, %v889_v39  ;;  %v1952_v46 = vld [vmem:[%s2554_s3 + $0x48] sm:$0xff]  ;;  %v1000_v47 = vunpack.c.l.b16 %v904_v41  ;;  %v1951_v52 = vld [vmem:[%s2554_s3 + $0x40] sm:$0xff]  ;;  %v874_v57 = vld [vmem:[#allocation2 + $0xd8] sm:$0xff] }
 0x147   : > { %v1001_v48 = vunpack.c.l.b16 %v905_v42  ;;  %v1016_v49 = vunpack.c.l.b16 %v920_v43  ;;  %v1927_v55 = vld [vmem:[%s2553_s2] sm:$0xff]  ;;  %v875_v58 = vld [vmem:[#allocation2 + $0x18] sm:$0xff]  ;;  %v891_v60 = vld [vmem:[#allocation2 + $0xc8] sm:$0xff]  ;;  %v906_v61 = vpack.c.bf16 %v874_v57, %v874_v57 }
 0x148   : > { %v1017_v50 = vunpack.c.l.b16 %v921_v44  ;;  %v1935_v56 = vld [vmem:[%s2553_s2 + $0x40] sm:$0xff]  ;;  %v907_v62 = vpack.c.bf16 %v875_v58, %v875_v58  ;;  %v923_v0 = vpack.c.bf16 %v891_v60, %v891_v60  ;;  %v1928_v7 = vld [vmem:[%s2553_s2 + $0x8] sm:$0xff]  ;;  %v876_v9 = vld [vmem:[#allocation2 + $0x50] sm:$0xff] }
 0x149   : > { %1294 = vmatpush.bf16.msra.mxu0 %v1948_v29  ;;  %2080 = vmatpush.bf16.msra.mxu2 %v1948_v29  ;;  %v1032_v53 = vpack.c.b16 %v1001_v48, %v1000_v47  ;;  %v890_v59 = vld [vmem:[#allocation2 + $0x40] sm:$0xff]  ;;  %v1002_v1 = vunpack.c.l.b16 %v906_v61  ;;  %v1936_v8 = vld [vmem:[%s2553_s2 + $0x48] sm:$0xff]  ;;  %v893_v12 = vld [vmem:[#allocation2 + $0x90] sm:$0xff]  ;;  %v908_v13 = vpack.c.bf16 %v876_v9, %v876_v9 }
 0x14a   : > { %1383 = vmatpush.bf16.msra.mxu1 %v1956_v30  ;;  %2088 = vmatpush.bf16.msra.mxu3 %v1956_v30  ;;  %v1040_v54 = vpack.c.b16 %v1017_v50, %v1016_v49  ;;  %v922_v63 = vpack.c.bf16 %v890_v59, %v890_v59  ;;  %v1003_v2 = vunpack.c.l.b16 %v907_v62  ;;  %v1019_v4 = vunpack.c.l.b16 %v923_v0  ;;  %v877_v10 = vld [vmem:[#allocation2 + $0x68] sm:$0xff]  ;;  %v892_v11 = vld [vmem:[#allocation2 + $0xe0] sm:$0xff]  ;;  %v1929_v23 = vld [vmem:[%s2553_s2 + $0x10] sm:$0xff] }
 0x14b   : > { %v909_v14 = vpack.c.bf16 %v877_v10, %v877_v10  ;;  %v924_v15 = vpack.c.bf16 %v892_v11, %v892_v11  ;;  %v925_v16 = vpack.c.bf16 %v893_v12, %v893_v12  ;;  %v1004_v17 = vunpack.c.l.b16 %v908_v13  ;;  %v1937_v24 = vld [vmem:[%s2553_s2 + $0x50] sm:$0xff]  ;;  %v879_v26 = vld [vmem:[#allocation2 + $0x48] sm:$0xff]  ;;  %v895_v28 = vld [vmem:[#allocation2 + $0xc0] sm:$0xff] }
 0x14c   : > { %v1018_v3 = vunpack.c.l.b16 %v922_v63  ;;  %v1033_v5 = vpack.c.b16 %v1003_v2, %v1002_v1  ;;  %v878_v25 = vld [vmem:[#allocation2 + $0x30] sm:$0xff]  ;;  %v911_v30 = vpack.c.bf16 %v879_v26, %v879_v26  ;;  %v1930_v39 = vld [vmem:[%s2553_s2 + $0x18] sm:$0xff]  ;;  %v880_v41 = vld [vmem:[#allocation2 + $0x80] sm:$0xff] }
 0x14d   : > { %1295 = vmatpush.bf16.msra.mxu0 %v1947_v31  ;;  %2081 = vmatpush.bf16.msra.mxu2 %v1947_v31  ;;  %v1005_v18 = vunpack.c.l.b16 %v909_v14  ;;  %v1020_v19 = vunpack.c.l.b16 %v924_v15  ;;  %v1021_v20 = vunpack.c.l.b16 %v925_v16  ;;  %v894_v27 = vld [vmem:[#allocation2 + $0x70] sm:$0xff]  ;;  %v910_v29 = vpack.c.bf16 %v878_v25, %v878_v25  ;;  %v881_v42 = vld [vmem:[#allocation2 + $0x88] sm:$0xff]  ;;  %v883_v58 = vld [vmem:[#allocation2 + $0xb8] sm:$0xff] }
 0x14e   : > { %1384 = vmatpush.bf16.msra.mxu1 %v1955_v32  ;;  %2089 = vmatpush.bf16.msra.mxu3 %v1955_v32  ;;  %v1041_v6 = vpack.c.b16 %v1019_v4, %v1018_v3  ;;  %v926_v31 = vpack.c.bf16 %v894_v27, %v894_v27  ;;  %v927_v32 = vpack.c.bf16 %v895_v28, %v895_v28  ;;  %v896_v43 = vld [vmem:[#allocation2 + $0xa8] sm:$0xff]  ;;  %v897_v44 = vld [vmem:[#allocation2 + $0xd0] sm:$0xff]  ;;  %v884_v9 = vld [vmem:[#allocation2 + $0x60] sm:$0xff] }
 0x14f   : > { %v1034_v21 = vpack.c.b16 %v1005_v18, %v1004_v17  ;;  %v1042_v22 = vpack.c.b16 %v1021_v20, %v1020_v19  ;;  %v928_v47 = vpack.c.bf16 %v896_v43, %v896_v43  ;;  %v929_v48 = vpack.c.bf16 %v897_v44, %v897_v44  ;;  %v882_v57 = vld [vmem:[#allocation2 + $0xe8] sm:$0xff]  ;;  %v898_v59 = vld [vmem:[#allocation2 + $0x10] sm:$0xff]  ;;  %v900_v11 = vld [vmem:[#allocation2 + $0xa0] sm:$0xff] }
 0x150   : > { %v1023_v36 = vunpack.c.l.b16 %v927_v32  ;;  %v899_v60 = vld [vmem:[#allocation2 + $0x28] sm:$0xff]  ;;  %v914_v61 = vpack.c.bf16 %v882_v57, %v882_v57  ;;  %v915_v62 = vpack.c.bf16 %v883_v58, %v883_v58  ;;  %v930_v63 = vpack.c.bf16 %v898_v59, %v898_v59  ;;  %v885_v10 = vld [vmem:[#allocation2 + $0xf0] sm:$0xff]  ;;  %v901_v12 = vld [vmem:[#allocation2 + $0xf8] sm:$0xff] }
 0x151   : > { %1296 = vmatpush.bf16.msra.mxu0 %v1946_v33  ;;  %2082 = vmatpush.bf16.msra.mxu2 %v1946_v33  ;;  %v1006_v33 = vunpack.c.l.b16 %v910_v29  ;;  %v931_v0 = vpack.c.bf16 %v899_v60, %v899_v60  ;;  %v916_v13 = vpack.c.bf16 %v884_v9, %v884_v9  ;;  %v917_v14 = vpack.c.bf16 %v885_v10, %v885_v10  ;;  %v886_v25 = vld [vmem:[#allocation2 + $0x8] sm:$0xff]  ;;  %v887_v26 = vld [vmem:[#allocation2 + $0x78] sm:$0xff]  ;;  %v902_v27 = vld [vmem:[#allocation2 + $0x20] sm:$0xff] }
 0x152   : > { %1385 = vmatpush.bf16.msra.mxu1 %v1954_v34  ;;  %2090 = vmatpush.bf16.msra.mxu3 %v1954_v34  ;;  %v1007_v34 = vunpack.c.l.b16 %v911_v30  ;;  %v1010_v1 = vunpack.c.l.b16 %v914_v61  ;;  %v1011_v2 = vunpack.c.l.b16 %v915_v62  ;;  %v1026_v3 = vunpack.c.l.b16 %v930_v63  ;;  %v903_v28 = vld [vmem:[#allocation2 + $0x98] sm:$0xff] }
 0x153   : > { %v1027_v4 = vunpack.c.l.b16 %v931_v0  ;;  %v932_v15 = vpack.c.bf16 %v900_v11, %v900_v11  ;;  %v933_v16 = vpack.c.bf16 %v901_v12, %v901_v12  ;;  %v1012_v17 = vunpack.c.l.b16 %v916_v13 }
 0x154   : > { %v1035_v37 = vpack.c.b16 %v1007_v34, %v1006_v33  ;;  %v1013_v18 = vunpack.c.l.b16 %v917_v14  ;;  %v918_v29 = vpack.c.bf16 %v886_v25, %v886_v25  ;;  %v919_v30 = vpack.c.bf16 %v887_v26, %v887_v26 }
 0x155   : > { %1297 = vmatpush.bf16.msra.mxu0 %v1945_v35  ;;  %2083 = vmatpush.bf16.msra.mxu2 %v1945_v35  ;;  %v1022_v35 = vunpack.c.l.b16 %v926_v31  ;;  %v1028_v19 = vunpack.c.l.b16 %v932_v15  ;;  %v1029_v20 = vunpack.c.l.b16 %v933_v16  ;;  %v934_v31 = vpack.c.bf16 %v902_v27, %v902_v27 }
 0x156   : > { %1386 = vmatpush.bf16.msra.mxu1 %v1953_v40  ;;  %2091 = vmatpush.bf16.msra.mxu3 %v1953_v40  ;;  %v1938_v40 = vld [vmem:[%s2553_s2 + $0x58] sm:$0xff]  ;;  %v935_v32 = vpack.c.bf16 %v903_v28, %v903_v28  ;;  %v1014_v33 = vunpack.c.l.b16 %v918_v29  ;;  %v1015_v34 = vunpack.c.l.b16 %v919_v30 }
 0x157   : > { %v1043_v38 = vpack.c.b16 %v1023_v36, %v1022_v35  ;;  %v1030_v35 = vunpack.c.l.b16 %v934_v31 }
 0x158   : > { %v1031_v36 = vunpack.c.l.b16 %v935_v32 }
 0x159   : > { %1298 = vmatpush.bf16.msra.mxu0 %v1944_v45  ;;  %2084 = vmatpush.bf16.msra.mxu2 %v1944_v45  ;;  %v912_v45 = vpack.c.bf16 %v880_v41, %v880_v41 }
 0x15a   : > { %1387 = vmatpush.bf16.msra.mxu1 %v1952_v46  ;;  %2092 = vmatpush.bf16.msra.mxu3 %v1952_v46  ;;  %v913_v46 = vpack.c.bf16 %v881_v42, %v881_v42  ;;  %v2454_v42 = vld [vmem:[%s2555_s4] ss:$0 sm:$0xff] }
 0x15b   : > { %v1008_v49 = vunpack.c.l.b16 %v912_v45 }
 0x15c   : > { %v1009_v50 = vunpack.c.l.b16 %v913_v46 }
 0x15d   : > { %1299 = vmatpush.bf16.msra.mxu0 %v1943_v51  ;;  %2085 = vmatpush.bf16.msra.mxu2 %v1943_v51  ;;  %v1024_v51 = vunpack.c.l.b16 %v928_v47 }
 0x15e   : > { %1388 = vmatpush.bf16.msra.mxu1 %v1951_v52  ;;  %2093 = vmatpush.bf16.msra.mxu3 %v1951_v52  ;;  %v1025_v52 = vunpack.c.l.b16 %v929_v48 }
 0x160   : > { %1300 = vmatmul.bf16.vlgmr.msra.gmra.mxu0 %v1032_v53  ;;  %1340 = vmatmul.bf16.vlgmr.msra.gmra.mxu2 %v1040_v54  ;;  %v1036_v53 = vpack.c.b16 %v1009_v50, %v1008_v49  ;;  %v1044_v54 = vpack.c.b16 %v1025_v52, %v1024_v51 }
 0x161   : > { %1389 = vmatmul.bf16.vlgmr.msra.gmra.mxu1 %v1927_v55  ;;  %1429 = vmatmul.bf16.vlgmr.msra.gmra.mxu3 %v1935_v56  ;;  %v1931_v55 = vld [vmem:[%s2553_s2 + $0x20] sm:$0xff] }
 0x162   : > { %v1939_v56 = vld [vmem:[%s2553_s2 + $0x60] sm:$0xff] }
 0x170   : > { %1305 = vmatmul.bf16.gmra.mxu0 %v1033_v5  ;;  %1345 = vmatmul.bf16.gmra.mxu2 %v1041_v6  ;;  %v1037_v5 = vpack.c.b16 %v1011_v2, %v1010_v1  ;;  %v1045_v6 = vpack.c.b16 %v1027_v4, %v1026_v3 }
 0x171   : > { %1394 = vmatmul.bf16.gmra.mxu1 %v1928_v7  ;;  %1434 = vmatmul.bf16.gmra.mxu3 %v1936_v8  ;;  %v1932_v7 = vld [vmem:[%s2553_s2 + $0x28] sm:$0xff] }
 0x172   : > { %v1940_v8 = vld [vmem:[%s2553_s2 + $0x68] sm:$0xff] }
 0x180   : > { %1310 = vmatmul.bf16.gmra.mxu0 %v1034_v21  ;;  %1350 = vmatmul.bf16.gmra.mxu2 %v1042_v22  ;;  %v1038_v21 = vpack.c.b16 %v1013_v18, %v1012_v17  ;;  %v1046_v22 = vpack.c.b16 %v1029_v20, %v1028_v19 }
 0x181   : > { %1399 = vmatmul.bf16.gmra.mxu1 %v1929_v23  ;;  %1439 = vmatmul.bf16.gmra.mxu3 %v1937_v24  ;;  %v1933_v23 = vld [vmem:[%s2553_s2 + $0x30] sm:$0xff] }
 0x182   : > { %v1941_v24 = vld [vmem:[%s2553_s2 + $0x70] sm:$0xff] }
 0x190   : > { %1315 = vmatmul.bf16.gmra.mxu0 %v1035_v37  ;;  %1355 = vmatmul.bf16.gmra.mxu2 %v1043_v38  ;;  %v1039_v37 = vpack.c.b16 %v1015_v34, %v1014_v33  ;;  %v1047_v38 = vpack.c.b16 %v1031_v36, %v1030_v35 }
 0x191   : > { %1404 = vmatmul.bf16.gmra.mxu1 %v1930_v39  ;;  %1444 = vmatmul.bf16.gmra.mxu3 %v1938_v40  ;;  %v1934_v39 = vld [vmem:[%s2553_s2 + $0x38] sm:$0xff] }
 0x192   : > { %v1942_v40 = vld [vmem:[%s2553_s2 + $0x78] sm:$0xff] }
 0x1a0   : > { %1320 = vmatmul.bf16.gmra.mxu0 %v1036_v53  ;;  %1360 = vmatmul.bf16.gmra.mxu2 %v1044_v54 }
 0x1a1   : > { %1409 = vmatmul.bf16.gmra.mxu1 %v1931_v55  ;;  %1449 = vmatmul.bf16.gmra.mxu3 %v1939_v56 }
 0x1b0   : > { %1325 = vmatmul.bf16.gmra.mxu0 %v1037_v5  ;;  %1365 = vmatmul.bf16.gmra.mxu2 %v1045_v6 }
 0x1b1   : > { %1414 = vmatmul.bf16.gmra.mxu1 %v1932_v7  ;;  %1454 = vmatmul.bf16.gmra.mxu3 %v1940_v8 }
 0x1c0   : > { %1330 = vmatmul.bf16.gmra.mxu0 %v1038_v21  ;;  %1370 = vmatmul.bf16.gmra.mxu2 %v1046_v22 }
 0x1c1   : > { %1419 = vmatmul.bf16.gmra.mxu1 %v1933_v23  ;;  %1459 = vmatmul.bf16.gmra.mxu3 %v1941_v24 }
 0x1d0   : > { %1335 = vmatmul.bf16.gmra.mxu0 %v1039_v37  ;;  %1375 = vmatmul.bf16.gmra.mxu2 %v1047_v38 }
 0x1d1   : > { %1424 = vmatmul.bf16.gmra.mxu1 %v1934_v39  ;;  %1464 = vmatmul.bf16.gmra.mxu3 %v1942_v40 }
 0x1dd   : > { %v1301_v41 = vpop.f32.mrf.mxu0 }
 0x1de   : > { %v1390_v43 = vpop.f32.mrf.mxu1  ;;  %v1302_v44 = vadd.f32 %v2454_v42, %v1301_v41 }
 0x1e0   : > { %v1391_v48 = vadd.f32 %v1390_v43, %v1302_v44 }
 0x1e2   : > { %v1470_v53 = vmax.f32 %v1391_v48, 0.0 }
 0x1e3   : > { %v1341_v45 = vpop.f32.mrf.mxu2 }
 0x1e4   : > { %v1430_v46 = vpop.f32.mrf.mxu3  ;;  %v1342_v51 = vadd.f32 %v2454_v42, %v1341_v45 }
 0x1e5   : > { %v1303_v47 = vpop.f32.mrf.mxu0 }
 0x1e6   : > { %v1304_v49 = vadd.f32 %v2454_v42, %v1303_v47  ;;  %v1392_v50 = vpop.f32.mrf.mxu1  ;;  %v1431_v56 = vadd.f32 %v1430_v46, %v1342_v51 }
 0x1e8   : > { %v1393_v52 = vadd.f32 %v1392_v50, %v1304_v49  ;;  %v1486_v63 = vmax.f32 %v1431_v56, 0.0 }
 0x1ea   : > { %v1471_v54 = vmax.f32 %v1393_v52, 0.0 }
 0x1eb   : > { %v1343_v55 = vpop.f32.mrf.mxu2 }
 0x1ec   : > { %v1962_v57 = vpack.c.bf16 %v1471_v54, %v1470_v53  ;;  %v1344_v58 = vadd.f32 %v2454_v42, %v1343_v55  ;;  %v1432_v59 = vpop.f32.mrf.mxu3 }
 0x1ed   : > { %v1306_v60 = vpop.f32.mrf.mxu0 }
 0x1ee   : > { %1963 = vst [vmem:[%s2556_s5] sm:$0xff] %v1962_v57   ;;  %v1433_v61 = vadd.f32 %v1432_v59, %v1344_v58  ;;  %v1395_v62 = vpop.f32.mrf.mxu1  ;;  %v1307_v2 = vadd.f32 %v2454_v42, %v1306_v60 }
 0x1f0   : > { %v1487_v0 = vmax.f32 %v1433_v61, 0.0  ;;  %v1396_v6 = vadd.f32 %v1395_v62, %v1307_v2 }
 0x1f2   : > { %v2002_v1 = vpack.c.bf16 %v1487_v0, %v1486_v63  ;;  %v1472_v11 = vmax.f32 %v1396_v6, 0.0 }
 0x1f3   : > { %v1346_v3 = vpop.f32.mrf.mxu2 }
 0x1f4   : > { %2046 = vst [vmem:[%s2556_s5 + $0x40] sm:$0xff] %v2002_v1   ;;  %v1435_v4 = vpop.f32.mrf.mxu3  ;;  %v1347_v9 = vadd.f32 %v2454_v42, %v1346_v3 }
 0x1f5   : > { %v1308_v5 = vpop.f32.mrf.mxu0 }
 0x1f6   : > { %v1309_v7 = vadd.f32 %v2454_v42, %v1308_v5  ;;  %v1397_v8 = vpop.f32.mrf.mxu1  ;;  %v1436_v14 = vadd.f32 %v1435_v4, %v1347_v9 }
 0x1f8   : > { %v1398_v10 = vadd.f32 %v1397_v8, %v1309_v7  ;;  %v1488_v21 = vmax.f32 %v1436_v14, 0.0 }
 0x1fa   : > { %v1473_v12 = vmax.f32 %v1398_v10, 0.0 }
 0x1fb   : > { %v1348_v13 = vpop.f32.mrf.mxu2 }
 0x1fc   : > { %v1967_v15 = vpack.c.bf16 %v1473_v12, %v1472_v11  ;;  %v1349_v16 = vadd.f32 %v2454_v42, %v1348_v13  ;;  %v1437_v17 = vpop.f32.mrf.mxu3 }
 0x1fd   : > { %v1311_v18 = vpop.f32.mrf.mxu0 }
 0x1fe   : > { %2039 = vst [vmem:[%s2556_s5 + $0x8] sm:$0xff] %v1967_v15   ;;  %v1438_v19 = vadd.f32 %v1437_v17, %v1349_v16  ;;  %v1400_v20 = vpop.f32.mrf.mxu1  ;;  %v1312_v24 = vadd.f32 %v2454_v42, %v1311_v18 }
 0x200   : > { %v1489_v22 = vmax.f32 %v1438_v19, 0.0  ;;  %v1401_v28 = vadd.f32 %v1400_v20, %v1312_v24 }
 0x202   : > { %v2007_v23 = vpack.c.bf16 %v1489_v22, %v1488_v21  ;;  %v1474_v33 = vmax.f32 %v1401_v28, 0.0 }
 0x203   : > { %v1351_v25 = vpop.f32.mrf.mxu2 }
 0x204   : > { %2047 = vst [vmem:[%s2556_s5 + $0x48] sm:$0xff] %v2007_v23   ;;  %v1440_v26 = vpop.f32.mrf.mxu3  ;;  %v1352_v31 = vadd.f32 %v2454_v42, %v1351_v25 }
 0x205   : > { %v1313_v27 = vpop.f32.mrf.mxu0 }
 0x206   : > { %v1314_v29 = vadd.f32 %v2454_v42, %v1313_v27  ;;  %v1402_v30 = vpop.f32.mrf.mxu1  ;;  %v1441_v36 = vadd.f32 %v1440_v26, %v1352_v31 }
 0x208   : > { %v1403_v32 = vadd.f32 %v1402_v30, %v1314_v29  ;;  %v1490_v44 = vmax.f32 %v1441_v36, 0.0 }
 0x20a   : > { %v1475_v34 = vmax.f32 %v1403_v32, 0.0 }
 0x20b   : > { %v1353_v35 = vpop.f32.mrf.mxu2 }
 0x20c   : > { %v1972_v37 = vpack.c.bf16 %v1475_v34, %v1474_v33  ;;  %v1354_v38 = vadd.f32 %v2454_v42, %v1353_v35  ;;  %v1442_v39 = vpop.f32.mrf.mxu3 }
 0x20d   : > { %v1316_v40 = vpop.f32.mrf.mxu0 }
 0x20e   : > { %2040 = vst [vmem:[%s2556_s5 + $0x10] sm:$0xff] %v1972_v37   ;;  %v1443_v41 = vadd.f32 %v1442_v39, %v1354_v38  ;;  %v1405_v43 = vpop.f32.mrf.mxu1  ;;  %v1317_v47 = vadd.f32 %v2454_v42, %v1316_v40 }
 0x210   : > { %v1491_v45 = vmax.f32 %v1443_v41, 0.0  ;;  %v1406_v51 = vadd.f32 %v1405_v43, %v1317_v47 }
 0x212   : > { %v2012_v46 = vpack.c.bf16 %v1491_v45, %v1490_v44  ;;  %v1476_v56 = vmax.f32 %v1406_v51, 0.0 }
 0x213   : > { %v1356_v48 = vpop.f32.mrf.mxu2 }
 0x214   : > { %2048 = vst [vmem:[%s2556_s5 + $0x50] sm:$0xff] %v2012_v46   ;;  %v1445_v49 = vpop.f32.mrf.mxu3  ;;  %v1357_v54 = vadd.f32 %v2454_v42, %v1356_v48 }
 0x215   : > { %v1318_v50 = vpop.f32.mrf.mxu0 }
 0x216   : > { %v1319_v52 = vadd.f32 %v2454_v42, %v1318_v50  ;;  %v1407_v53 = vpop.f32.mrf.mxu1  ;;  %v1446_v59 = vadd.f32 %v1445_v49, %v1357_v54 }
 0x218   : > { %v1408_v55 = vadd.f32 %v1407_v53, %v1319_v52  ;;  %v1492_v2 = vmax.f32 %v1446_v59, 0.0 }
 0x21a   : > { %v1477_v57 = vmax.f32 %v1408_v55, 0.0 }
 0x21b   : > { %v1358_v58 = vpop.f32.mrf.mxu2 }
 0x21c   : > { %v1977_v60 = vpack.c.bf16 %v1477_v57, %v1476_v56  ;;  %v1359_v61 = vadd.f32 %v2454_v42, %v1358_v58  ;;  %v1447_v62 = vpop.f32.mrf.mxu3 }
 0x21d   : > { %v1321_v63 = vpop.f32.mrf.mxu0 }
 0x21e   : > { %2041 = vst [vmem:[%s2556_s5 + $0x18] sm:$0xff] %v1977_v60   ;;  %v1448_v0 = vadd.f32 %v1447_v62, %v1359_v61  ;;  %v1410_v1 = vpop.f32.mrf.mxu1  ;;  %v1322_v5 = vadd.f32 %v2454_v42, %v1321_v63 }
 0x220   : > { %v1493_v3 = vmax.f32 %v1448_v0, 0.0  ;;  %v1411_v9 = vadd.f32 %v1410_v1, %v1322_v5 }
 0x222   : > { %v2017_v4 = vpack.c.bf16 %v1493_v3, %v1492_v2  ;;  %v1478_v14 = vmax.f32 %v1411_v9, 0.0 }
 0x223   : > { %v1361_v6 = vpop.f32.mrf.mxu2 }
 0x224   : > { %2049 = vst [vmem:[%s2556_s5 + $0x58] sm:$0xff] %v2017_v4   ;;  %v1450_v7 = vpop.f32.mrf.mxu3  ;;  %v1362_v12 = vadd.f32 %v2454_v42, %v1361_v6 }
 0x225   : > { %v1323_v8 = vpop.f32.mrf.mxu0 }
 0x226   : > { %v1324_v10 = vadd.f32 %v2454_v42, %v1323_v8  ;;  %v1412_v11 = vpop.f32.mrf.mxu1  ;;  %v1451_v17 = vadd.f32 %v1450_v7, %v1362_v12 }
 0x228   : > { %v1413_v13 = vadd.f32 %v1412_v11, %v1324_v10  ;;  %v1494_v24 = vmax.f32 %v1451_v17, 0.0 }
 0x22a   : > { %v1479_v15 = vmax.f32 %v1413_v13, 0.0 }
 0x22b   : > { %v1363_v16 = vpop.f32.mrf.mxu2 }
 0x22c   : > { %v1982_v18 = vpack.c.bf16 %v1479_v15, %v1478_v14  ;;  %v1364_v19 = vadd.f32 %v2454_v42, %v1363_v16  ;;  %v1452_v20 = vpop.f32.mrf.mxu3 }
 0x22d   : > { %v1326_v21 = vpop.f32.mrf.mxu0 }
 0x22e   : > { %2042 = vst [vmem:[%s2556_s5 + $0x20] sm:$0xff] %v1982_v18   ;;  %v1453_v22 = vadd.f32 %v1452_v20, %v1364_v19  ;;  %v1415_v23 = vpop.f32.mrf.mxu1  ;;  %v1327_v27 = vadd.f32 %v2454_v42, %v1326_v21 }
 0x230   : > { %v1495_v25 = vmax.f32 %v1453_v22, 0.0  ;;  %v1416_v31 = vadd.f32 %v1415_v23, %v1327_v27 }
 0x232   : > { %v2022_v26 = vpack.c.bf16 %v1495_v25, %v1494_v24  ;;  %v1480_v36 = vmax.f32 %v1416_v31, 0.0 }
 0x233   : > { %v1366_v28 = vpop.f32.mrf.mxu2 }
 0x234   : > { %2050 = vst [vmem:[%s2556_s5 + $0x60] sm:$0xff] %v2022_v26   ;;  %v1455_v29 = vpop.f32.mrf.mxu3  ;;  %v1367_v34 = vadd.f32 %v2454_v42, %v1366_v28 }
 0x235   : > { %v1328_v30 = vpop.f32.mrf.mxu0 }
 0x236   : > { %v1329_v32 = vadd.f32 %v2454_v42, %v1328_v30  ;;  %v1417_v33 = vpop.f32.mrf.mxu1  ;;  %v1456_v39 = vadd.f32 %v1455_v29, %v1367_v34 }
 0x238   : > { %v1418_v35 = vadd.f32 %v1417_v33, %v1329_v32  ;;  %v1496_v47 = vmax.f32 %v1456_v39, 0.0 }
 0x23a   : > { %v1481_v37 = vmax.f32 %v1418_v35, 0.0 }
 0x23b   : > { %v1368_v38 = vpop.f32.mrf.mxu2 }
 0x23c   : > { %v1987_v40 = vpack.c.bf16 %v1481_v37, %v1480_v36  ;;  %v1369_v41 = vadd.f32 %v2454_v42, %v1368_v38  ;;  %v1457_v43 = vpop.f32.mrf.mxu3 }
 0x23d   : > { %v1331_v44 = vpop.f32.mrf.mxu0 }
 0x23e   : > { %2043 = vst [vmem:[%s2556_s5 + $0x28] sm:$0xff] %v1987_v40   ;;  %v1458_v45 = vadd.f32 %v1457_v43, %v1369_v41  ;;  %v1420_v46 = vpop.f32.mrf.mxu1  ;;  %v1332_v50 = vadd.f32 %v2454_v42, %v1331_v44 }
 0x240   : > { %v1497_v48 = vmax.f32 %v1458_v45, 0.0  ;;  %v1421_v54 = vadd.f32 %v1420_v46, %v1332_v50 }
 0x242   : > { %v2027_v49 = vpack.c.bf16 %v1497_v48, %v1496_v47  ;;  %v1482_v59 = vmax.f32 %v1421_v54, 0.0 }
 0x243   : > { %v1371_v51 = vpop.f32.mrf.mxu2 }
 0x244   : > { %2051 = vst [vmem:[%s2556_s5 + $0x68] sm:$0xff] %v2027_v49   ;;  %v1460_v52 = vpop.f32.mrf.mxu3  ;;  %v1372_v57 = vadd.f32 %v2454_v42, %v1371_v51 }
 0x245   : > { %v1333_v53 = vpop.f32.mrf.mxu0 }
 0x246   : > { %v1334_v55 = vadd.f32 %v2454_v42, %v1333_v53  ;;  %v1422_v56 = vpop.f32.mrf.mxu1  ;;  %v1461_v62 = vadd.f32 %v1460_v52, %v1372_v57 }
 0x248   : > { %v1423_v58 = vadd.f32 %v1422_v56, %v1334_v55  ;;  %v1498_v5 = vmax.f32 %v1461_v62, 0.0 }
 0x24a   : > { %v1483_v60 = vmax.f32 %v1423_v58, 0.0 }
 0x24b   : > { %v1373_v61 = vpop.f32.mrf.mxu2 }
 0x24c   : > { %v1992_v63 = vpack.c.bf16 %v1483_v60, %v1482_v59  ;;  %v1374_v0 = vadd.f32 %v2454_v42, %v1373_v61  ;;  %v1462_v1 = vpop.f32.mrf.mxu3 }
 0x24d   : > { %v1336_v2 = vpop.f32.mrf.mxu0 }
 0x24e   : > { %2044 = vst [vmem:[%s2556_s5 + $0x30] sm:$0xff] %v1992_v63   ;;  %v1463_v3 = vadd.f32 %v1462_v1, %v1374_v0  ;;  %v1425_v4 = vpop.f32.mrf.mxu1  ;;  %v1337_v8 = vadd.f32 %v2454_v42, %v1336_v2 }
 0x250   : > { %v1499_v6 = vmax.f32 %v1463_v3, 0.0  ;;  %v1426_v12 = vadd.f32 %v1425_v4, %v1337_v8 }
 0x252   : > { %v2032_v7 = vpack.c.bf16 %v1499_v6, %v1498_v5  ;;  %v1484_v17 = vmax.f32 %v1426_v12, 0.0 }
 0x253   : > { %v1376_v9 = vpop.f32.mrf.mxu2 }
 0x254   : > { %2052 = vst [vmem:[%s2556_s5 + $0x70] sm:$0xff] %v2032_v7   ;;  %v1465_v10 = vpop.f32.mrf.mxu3  ;;  %v1377_v15 = vadd.f32 %v2454_v42, %v1376_v9 }
 0x255   : > { %v1338_v11 = vpop.f32.mrf.mxu0 }
 0x256   : > { %v1339_v13 = vadd.f32 %v2454_v42, %v1338_v11  ;;  %v1427_v14 = vpop.f32.mrf.mxu1  ;;  %v1466_v20 = vadd.f32 %v1465_v10, %v1377_v15 }
 0x258   : > { %v1428_v16 = vadd.f32 %v1427_v14, %v1339_v13  ;;  %v1500_v25 = vmax.f32 %v1466_v20, 0.0 }
 0x25a   : > { %v1485_v18 = vmax.f32 %v1428_v16, 0.0 }
 0x25b   : > { %v1378_v19 = vpop.f32.mrf.mxu2 }
 0x25c   : > { %v1997_v21 = vpack.c.bf16 %v1485_v18, %v1484_v17  ;;  %v1379_v22 = vadd.f32 %v2454_v42, %v1378_v19  ;;  %v1467_v23 = vpop.f32.mrf.mxu3 }
 0x25e   : > { %2045 = vst [vmem:[%s2556_s5 + $0x38] sm:$0xff] %v1997_v21   ;;  %v1468_v24 = vadd.f32 %v1467_v23, %v1379_v22 }
 0x260   : > { %v1501_v26 = vmax.f32 %v1468_v24, 0.0 }
 0x262   : > { %v2037_v27 = vpack.c.bf16 %v1501_v26, %v1500_v25 }
 0x264   : > { %2053 = vst [vmem:[%s2556_s5 + $0x78] sm:$0xff] %v2037_v27  }
 0x265 PF: > { %s15_s22 = sadd.s32 1, %s2174_s22   ;;  %s2557_s18 = smov %s2162_s19 }
 0x266   : > { %p12_p12 = scmp.ge.s32.totalorder %s15_s22, 4   ;;  %s2558_s19 = smov %s2242_s26 }
 0x267   : > { %s2559_s20 = smov %s2170_s21  ;;  %s2560_s21 = smov %s2562_s23 }
 0x268   :  { %14 = sbr.rel (!%p12_p12) target bundleno = 3 (0x3), region = 130 }

</bundles_post_ra>
